<compile_context>
chip_gen: v7x
topology: tpu7x:2x2x1
jax: 0.10.0
libtpu: 0.0.40
codegen_flags: <defaults>
</compile_context>

<pallas_src>
import functools

import jax
import jax.numpy as jnp
from jax.experimental import pallas as pl
from jax.experimental.pallas import tpu as pltpu


# ----------------------------------------------------------------------------
# Tiling helpers
# ----------------------------------------------------------------------------
def _round_up(x, m):
    return (x + m - 1) // m * m


def _tile_and_pad(size, min_mult, max_tile):
    """Pick (tile, padded) with padded % tile == 0 and TPU-friendly alignment."""
    if size <= max_tile:
        tile = _round_up(size, min_mult)
        return tile, tile
    padded = _round_up(size, 128)
    for tile in range(max_tile, 127, -128):
        if padded % tile == 0:
            return tile, padded
    return max_tile, _round_up(size, max_tile)


# ----------------------------------------------------------------------------
# Pallas kernel: tiled  out = relu?(x @ w + b)  with K-axis accumulation
# ----------------------------------------------------------------------------
def _matmul_bias_kernel(x_ref, w_ref, b_ref, o_ref, acc_ref, *, relu: bool):
    k = pl.program_id(2)

    @pl.when(k == 0)
    def _init():
        acc_ref[...] = jnp.zeros_like(acc_ref)

    acc_ref[...] += jnp.dot(x_ref[...], w_ref[...],
                            preferred_element_type=jnp.float32)

    @pl.when(k == pl.num_programs(2) - 1)
    def _flush():
        acc = acc_ref[...] + b_ref[...]          # (1, TN) broadcasts over rows
        if relu:
            acc = jnp.maximum(acc, 0.0)
        o_ref[...] = acc.astype(o_ref.dtype)


def pallas_matmul_bias(x, w, b, *, relu: bool, compute_dtype=jnp.bfloat16):
    """out = relu?(x @ w + b).  x:(M,K), w:(K,N), b:(N,) -> (M,N) float32."""
    M, K = x.shape
    K2, N = w.shape
    assert K == K2 and b.shape == (N,)

    # Tile sizes: M sublane-aligned (16 for bf16 packing), K/N lane-dense (>=128).
    TM, Mp = _tile_and_pad(M, 16, 256)
    TK, Kp = _tile_and_pad(K, 128, 512)
    TN, Np = _tile_and_pad(N, 128, 256)

    xp = jnp.pad(x, ((0, Mp - M), (0, Kp - K))).astype(compute_dtype)
    wp = jnp.pad(w, ((0, Kp - K), (0, Np - N))).astype(compute_dtype)
    bp = jnp.pad(b, (0, Np - N)).reshape(1, Np).astype(jnp.float32)

    grid = (Mp // TM, Np // TN, Kp // TK)
    itemsize = jnp.dtype(compute_dtype).itemsize
    cost = pl.CostEstimate(
        flops=2 * Mp * Kp * Np,
        transcendentals=0,
        bytes_accessed=(Mp * Kp + Kp * Np) * itemsize + Mp * Np * 4 + Np * 4,
    )

    out = pl.pallas_call(
        functools.partial(_matmul_bias_kernel, relu=relu),
        out_shape=jax.ShapeDtypeStruct((Mp, Np), jnp.float32),
        grid_spec=pltpu.PrefetchScalarGridSpec(
            num_scalar_prefetch=0,
            grid=grid,
            in_specs=[
                pl.BlockSpec((TM, TK), lambda i, j, k: (i, k)),
                pl.BlockSpec((TK, TN), lambda i, j, k: (k, j)),
                pl.BlockSpec((1, TN), lambda i, j, k: (0, j)),
            ],
            out_specs=pl.BlockSpec((TM, TN), lambda i, j, k: (i, j)),
            scratch_shapes=[pltpu.VMEM((TM, TN), jnp.float32)],
        ),
        compiler_params=pltpu.CompilerParams(
            dimension_semantics=("parallel", "parallel", "arbitrary"),
            vmem_limit_bytes=48 * 1024 * 1024,
        ),
        cost_estimate=cost,
    )(xp, wp, bp)
    return out[:M, :N]


# ----------------------------------------------------------------------------
# NHWC im2col glue (plain JAX: strided slicing + concat, no math)
# ----------------------------------------------------------------------------
def _im2col_nhwc(x, kh, kw, stride):
    n, h, w, c = x.shape
    oh = (h - kh) // stride + 1
    ow = (w - kw) // stride + 1
    cols = []
    for i in range(kh):
        for j in range(kw):
            cols.append(x[:, i:i + stride * oh:stride,
                          j:j + stride * ow:stride, :])
    p = jnp.concatenate(cols, axis=-1)           # (N, oh, ow, kh*kw*C)
    return p.reshape(n * oh * ow, kh * kw * c), oh, ow


def conv2d_relu_nhwc(x, w_mat, b, kh, kw, stride, *, relu=True):
    """x: (N,H,W,C) NHWC; w_mat: (kh*kw*C, O); b: (O,).  Valid padding."""
    n = x.shape[0]
    o = w_mat.shape[1]
    patches, oh, ow = _im2col_nhwc(x, kh, kw, stride)
    out = pallas_matmul_bias(patches, w_mat, b, relu=relu)   # (N*oh*ow, O)
    return out.reshape(n, oh, ow, o)             # stay channels-last


# ----------------------------------------------------------------------------
# DQN parameters (PyTorch layout) + one-time layout prep + forward
# ----------------------------------------------------------------------------
def _conv_stack_hw(h, w):
    h1, w1 = (h - 8) // 4 + 1, (w - 8) // 4 + 1
    h2, w2 = (h1 - 4) // 2 + 1, (w1 - 4) // 2 + 1
    h3, w3 = (h2 - 3) // 1 + 1, (w2 - 3) // 1 + 1
    return (h1, w1), (h2, w2), (h3, w3)


def init_dqn_params(key, in_channels, num_actions, input_hw):
    """PyTorch-layout parameters: conv (O,C,kh,kw), linear (out,in)."""
    def uniform(k, shape, fan_in):
        bound = 1.0 / jnp.sqrt(jnp.float32(fan_in))
        return jax.random.uniform(k, shape, jnp.float32, -bound, bound)

    ks = jax.random.split(key, 10)
    params = {}
    params["c1_w"] = uniform(ks[0], (32, in_channels, 8, 8), in_channels * 64)
    params["c1_b"] = uniform(ks[1], (32,), in_channels * 64)
    params["c2_w"] = uniform(ks[2], (64, 32, 4, 4), 32 * 16)
    params["c2_b"] = uniform(ks[3], (64,), 32 * 16)
    params["c3_w"] = uniform(ks[4], (64, 64, 3, 3), 64 * 9)
    params["c3_b"] = uniform(ks[5], (64,), 64 * 9)

    _, _, (h3, w3) = _conv_stack_hw(*input_hw)
    feat = 64 * h3 * w3
    params["l1_w"] = uniform(ks[6], (512, feat), feat)
    params["l1_b"] = uniform(ks[7], (512,), feat)
    params["l2_w"] = uniform(ks[8], (num_actions, 512), 512)
    params["l2_b"] = uniform(ks[9], (num_actions,), 512)
    return params


def prepare_params(params, input_hw, compute_dtype=jnp.bfloat16):
    """One-time layout prep: conv weights -> (kh*kw*C, O) for NHWC im2col,
    linear weights -> (in, out), l1 input features reordered NCHW-flat ->
    NHWC-flat so the forward matches the PyTorch module exactly."""
    _, _, (h3, w3) = _conv_stack_hw(*input_hw)

    def conv_mat(w):                         # (O,C,kh,kw) -> (kh*kw*C, O)
        o, c, kh, kw = w.shape
        return (w.transpose(2, 3, 1, 0)
                 .reshape(kh * kw * c, o)
                 .astype(compute_dtype))

    l1_w = params["l1_w"]                    # (512, 64*h3*w3) over NCHW-flat
    feat = l1_w.shape[1]
    l1_w = (l1_w.reshape(512, 64, h3, w3)
                .transpose(0, 2, 3, 1)       # reorder to NHWC-flat features
                .reshape(512, feat)
                .T.astype(compute_dtype))    # (feat, 512)
    l2_w = params["l2_w"].T.astype(compute_dtype)   # (512, num_actions)

    return {
        "c1_w": conv_mat(params["c1_w"]), "c1_b": params["c1_b"],
        "c2_w": conv_mat(params["c2_w"]), "c2_b": params["c2_b"],
        "c3_w": conv_mat(params["c3_w"]), "c3_b": params["c3_b"],
        "l1_w": l1_w, "l1_b": params["l1_b"],
        "l2_w": l2_w, "l2_b": params["l2_b"],
    }


@jax.jit
def dqn_forward(prepared, x_nchw):
    # Single layout change at the boundary; everything after is channels-last.
    x = jnp.transpose(x_nchw, (0, 2, 3, 1))                      # NCHW -> NHWC
    x = conv2d_relu_nhwc(x, prepared["c1_w"], prepared["c1_b"], 8, 8, 4)
    x = conv2d_relu_nhwc(x, prepared["c2_w"], prepared["c2_b"], 4, 4, 2)
    x = conv2d_relu_nhwc(x, prepared["c3_w"], prepared["c3_b"], 3, 3, 1)
    n = x.shape[0]
    x = x.reshape(n, -1)                     # NHWC flatten (matches l1_w prep)
    x = pallas_matmul_bias(x, prepared["l1_w"], prepared["l1_b"], relu=True)
    x = pallas_matmul_bias(x, prepared["l2_w"], prepared["l2_b"], relu=False)
    return x


if __name__ == "__main__":
    # Smallest valid spatial size for the conv stack (k8s4 -> k4s2 -> k3s1) is
    # 36x36: 36 -> 8 -> 3 -> 1, so feature_size = 64.
    batch, channels, spatial = 2, 4, 36
    num_actions = 6

    key = jax.random.PRNGKey(0)
    k_params, k_x = jax.random.split(key)
    params = init_dqn_params(k_params, channels, num_actions,
                             (spatial, spatial))
    prepared = prepare_params(params, (spatial, spatial))
    x = jax.random.normal(k_x, (batch, channels, spatial, spatial),
                          dtype=jnp.float32)

    out = dqn_forward(prepared, x)
    jax.block_until_ready(out)
    assert out.shape == (batch, num_actions), out.shape
    assert bool(jnp.all(jnp.isfinite(out)))
    print("KERNEL_OK")
</pallas_src>

<mosaic_0001>
module attributes {stable_mosaic.version = 11 : i64} {
  func.func @_matmul_bias_kernel(%arg0: i32, %arg1: i32, %arg2: i32, %arg3: memref<128x256xbf16, #tpu.memory_space<vmem>>, %arg4: memref<256x128xbf16, #tpu.memory_space<vmem>>, %arg5: memref<1x128xf32, #tpu.memory_space<vmem>>, %arg6: memref<128x128xf32, #tpu.memory_space<vmem>>, %arg7: memref<128x128xf32, #tpu.memory_space<vmem>>) attributes {dimension_semantics = [#tpu.dimension_semantics<parallel>, #tpu.dimension_semantics<parallel>, #tpu.dimension_semantics<arbitrary>], iteration_bounds = array<i64: 1, 1, 1>, scalar_prefetch = 0 : i64, scratch_operands = 1 : i64, tpu.core_type = #tpu.core_type<tc>, window_params = [{transform_indices = @transform_0, window_bounds = array<i64: 128, 256>}, {transform_indices = @transform_1, window_bounds = array<i64: 256, 128>}, {transform_indices = @transform_2, window_bounds = array<i64: 1, 128>}, {transform_indices = @transform_3, window_bounds = array<i64: 128, 128>}]} {
    %c0_i32 = arith.constant 0 : i32
    %0 = arith.cmpi eq, %arg2, %c0_i32 : i32
    %1 = arith.extui %0 : i1 to i32
    %c0_i32_0 = arith.constant 0 : i32
    %2 = arith.cmpi ne, %1, %c0_i32_0 : i32
    scf.if %2 {
      %cst_10 = arith.constant 0.000000e+00 : f32
      %12 = vector.broadcast %cst_10 : f32 to vector<128x128xf32>
      %c0_11 = arith.constant 0 : index
      %c0_12 = arith.constant 0 : index
      %13 = vector.load %arg7[%c0_11, %c0_12] : memref<128x128xf32, #tpu.memory_space<vmem>>, vector<128x128xf32>
      tpu.vector_store %arg7[%c0_11, %c0_12], %12 {strides = array<i32>} : memref<128x128xf32, #tpu.memory_space<vmem>>, vector<128x128xf32>,
    } else {
    }
    %c0 = arith.constant 0 : index
    %c0_1 = arith.constant 0 : index
    %3 = vector.load %arg7[%c0, %c0_1] : memref<128x128xf32, #tpu.memory_space<vmem>>, vector<128x128xf32>
    %c0_2 = arith.constant 0 : index
    %c0_3 = arith.constant 0 : index
    %4 = vector.load %arg3[%c0_2, %c0_3] : memref<128x256xbf16, #tpu.memory_space<vmem>>, vector<128x256xbf16>
    %c0_4 = arith.constant 0 : index
    %c0_5 = arith.constant 0 : index
    %5 = vector.load %arg4[%c0_4, %c0_5] : memref<256x128xbf16, #tpu.memory_space<vmem>>, vector<256x128xbf16>
    %cst = arith.constant dense<0.000000e+00> : vector<128x128xf32>
    %6 = tpu.matmul %4, %5, %cst {dimension_numbers = #tpu.dot_dimension_numbers<[1], [0], [0], [1], [0, 0, 1, 1], [], []>} : vector<128x256xbf16>, vector<256x128xbf16>, vector<128x128xf32> -> vector<128x128xf32>
    %7 = arith.addf %3, %6 : vector<128x128xf32>
    %c0_6 = arith.constant 0 : index
    %c0_7 = arith.constant 0 : index
    %8 = vector.load %arg7[%c0_6, %c0_7] : memref<128x128xf32, #tpu.memory_space<vmem>>, vector<128x128xf32>
    tpu.vector_store %arg7[%c0_6, %c0_7], %7 {strides = array<i32>} : memref<128x128xf32, #tpu.memory_space<vmem>>, vector<128x128xf32>,
    %c0_i32_8 = arith.constant 0 : i32
    %9 = arith.cmpi eq, %arg2, %c0_i32_8 : i32
    %10 = arith.extui %9 : i1 to i32
    %c0_i32_9 = arith.constant 0 : i32
    %11 = arith.cmpi ne, %10, %c0_i32_9 : i32
    scf.if %11 {
      %c0_10 = arith.constant 0 : index
      %c0_11 = arith.constant 0 : index
      %12 = vector.load %arg7[%c0_10, %c0_11] : memref<128x128xf32, #tpu.memory_space<vmem>>, vector<128x128xf32>
      %c0_12 = arith.constant 0 : index
      %c0_13 = arith.constant 0 : index
      %13 = vector.load %arg5[%c0_12, %c0_13] : memref<1x128xf32, #tpu.memory_space<vmem>>, vector<1x128xf32>
      %14 = vector.broadcast %13 : vector<1x128xf32> to vector<128x128xf32>
      %15 = arith.addf %12, %14 : vector<128x128xf32>
      %cst_14 = arith.constant 0.000000e+00 : f32
      %16 = vector.broadcast %cst_14 : f32 to vector<128x128xf32>
      %17 = arith.maximumf %15, %16 : vector<128x128xf32>
      %c0_15 = arith.constant 0 : index
      %c0_16 = arith.constant 0 : index
      %18 = vector.load %arg6[%c0_15, %c0_16] : memref<128x128xf32, #tpu.memory_space<vmem>>, vector<128x128xf32>
      tpu.vector_store %arg6[%c0_15, %c0_16], %17 {strides = array<i32>} : memref<128x128xf32, #tpu.memory_space<vmem>>, vector<128x128xf32>,
    } else {
    }
    return
  }
  func.func @transform_0(%arg0: i32, %arg1: i32, %arg2: i32) -> (i32, i32) {
    %c0_i32 = arith.constant 0 : i32
    return %arg0, %arg2 : i32, i32
  }
  func.func @transform_1(%arg0: i32, %arg1: i32, %arg2: i32) -> (i32, i32) {
    %c0_i32 = arith.constant 0 : i32
    return %arg2, %arg1 : i32, i32
  }
  func.func @transform_2(%arg0: i32, %arg1: i32, %arg2: i32) -> (i32, i32) {
    %c0_i32 = arith.constant 0 : i32
    %c0_i32_0 = arith.constant 0 : i32
    return %c0_i32, %arg1 : i32, i32
  }
  func.func @transform_3(%arg0: i32, %arg1: i32, %arg2: i32) -> (i32, i32) {
    %c0_i32 = arith.constant 0 : i32
    return %arg0, %arg1 : i32, i32
  }
}

module attributes {stable_mosaic.version = 11 : i64} {
  func.func @_matmul_bias_kernel(%arg0: i32, %arg1: i32, %arg2: i32, %arg3: memref<32x512xbf16, #tpu.memory_space<vmem>>, %arg4: memref<512x128xbf16, #tpu.memory_space<vmem>>, %arg5: memref<1x128xf32, #tpu.memory_space<vmem>>, %arg6: memref<32x128xf32, #tpu.memory_space<vmem>>, %arg7: memref<32x128xf32, #tpu.memory_space<vmem>>) attributes {dimension_semantics = [#tpu.dimension_semantics<parallel>, #tpu.dimension_semantics<parallel>, #tpu.dimension_semantics<arbitrary>], iteration_bounds = array<i64: 1, 1, 1>, scalar_prefetch = 0 : i64, scratch_operands = 1 : i64, tpu.core_type = #tpu.core_type<tc>, window_params = [{transform_indices = @transform_0, window_bounds = array<i64: 32, 512>}, {transform_indices = @transform_1, window_bounds = array<i64: 512, 128>}, {transform_indices = @transform_2, window_bounds = array<i64: 1, 128>}, {transform_indices = @transform_3, window_bounds = array<i64: 32, 128>}]} {
    %c0_i32 = arith.constant 0 : i32
    %0 = arith.cmpi eq, %arg2, %c0_i32 : i32
    %1 = arith.extui %0 : i1 to i32
    %c0_i32_0 = arith.constant 0 : i32
    %2 = arith.cmpi ne, %1, %c0_i32_0 : i32
    scf.if %2 {
      %cst_10 = arith.constant 0.000000e+00 : f32
      %12 = vector.broadcast %cst_10 : f32 to vector<32x128xf32>
      %c0_11 = arith.constant 0 : index
      %c0_12 = arith.constant 0 : index
      %13 = vector.load %arg7[%c0_11, %c0_12] : memref<32x128xf32, #tpu.memory_space<vmem>>, vector<32x128xf32>
      tpu.vector_store %arg7[%c0_11, %c0_12], %12 {strides = array<i32>} : memref<32x128xf32, #tpu.memory_space<vmem>>, vector<32x128xf32>,
    } else {
    }
    %c0 = arith.constant 0 : index
    %c0_1 = arith.constant 0 : index
    %3 = vector.load %arg7[%c0, %c0_1] : memref<32x128xf32, #tpu.memory_space<vmem>>, vector<32x128xf32>
    %c0_2 = arith.constant 0 : index
    %c0_3 = arith.constant 0 : index
    %4 = vector.load %arg3[%c0_2, %c0_3] : memref<32x512xbf16, #tpu.memory_space<vmem>>, vector<32x512xbf16>
    %c0_4 = arith.constant 0 : index
    %c0_5 = arith.constant 0 : index
    %5 = vector.load %arg4[%c0_4, %c0_5] : memref<512x128xbf16, #tpu.memory_space<vmem>>, vector<512x128xbf16>
    %cst = arith.constant dense<0.000000e+00> : vector<32x128xf32>
    %6 = tpu.matmul %4, %5, %cst {dimension_numbers = #tpu.dot_dimension_numbers<[1], [0], [0], [1], [0, 0, 1, 1], [], []>} : vector<32x512xbf16>, vector<512x128xbf16>, vector<32x128xf32> -> vector<32x128xf32>
    %7 = arith.addf %3, %6 : vector<32x128xf32>
    %c0_6 = arith.constant 0 : index
    %c0_7 = arith.constant 0 : index
    %8 = vector.load %arg7[%c0_6, %c0_7] : memref<32x128xf32, #tpu.memory_space<vmem>>, vector<32x128xf32>
    tpu.vector_store %arg7[%c0_6, %c0_7], %7 {strides = array<i32>} : memref<32x128xf32, #tpu.memory_space<vmem>>, vector<32x128xf32>,
    %c0_i32_8 = arith.constant 0 : i32
    %9 = arith.cmpi eq, %arg2, %c0_i32_8 : i32
    %10 = arith.extui %9 : i1 to i32
    %c0_i32_9 = arith.constant 0 : i32
    %11 = arith.cmpi ne, %10, %c0_i32_9 : i32
    scf.if %11 {
      %c0_10 = arith.constant 0 : index
      %c0_11 = arith.constant 0 : index
      %12 = vector.load %arg7[%c0_10, %c0_11] : memref<32x128xf32, #tpu.memory_space<vmem>>, vector<32x128xf32>
      %c0_12 = arith.constant 0 : index
      %c0_13 = arith.constant 0 : index
      %13 = vector.load %arg5[%c0_12, %c0_13] : memref<1x128xf32, #tpu.memory_space<vmem>>, vector<1x128xf32>
      %14 = vector.broadcast %13 : vector<1x128xf32> to vector<32x128xf32>
      %15 = arith.addf %12, %14 : vector<32x128xf32>
      %cst_14 = arith.constant 0.000000e+00 : f32
      %16 = vector.broadcast %cst_14 : f32 to vector<32x128xf32>
      %17 = arith.maximumf %15, %16 : vector<32x128xf32>
      %c0_15 = arith.constant 0 : index
      %c0_16 = arith.constant 0 : index
      %18 = vector.load %arg6[%c0_15, %c0_16] : memref<32x128xf32, #tpu.memory_space<vmem>>, vector<32x128xf32>
      tpu.vector_store %arg6[%c0_15, %c0_16], %17 {strides = array<i32>} : memref<32x128xf32, #tpu.memory_space<vmem>>, vector<32x128xf32>,
    } else {
    }
    return
  }
  func.func @transform_0(%arg0: i32, %arg1: i32, %arg2: i32) -> (i32, i32) {
    %c0_i32 = arith.constant 0 : i32
    return %arg0, %arg2 : i32, i32
  }
  func.func @transform_1(%arg0: i32, %arg1: i32, %arg2: i32) -> (i32, i32) {
    %c0_i32 = arith.constant 0 : i32
    return %arg2, %arg1 : i32, i32
  }
  func.func @transform_2(%arg0: i32, %arg1: i32, %arg2: i32) -> (i32, i32) {
    %c0_i32 = arith.constant 0 : i32
    %c0_i32_0 = arith.constant 0 : i32
    return %c0_i32, %arg1 : i32, i32
  }
  func.func @transform_3(%arg0: i32, %arg1: i32, %arg2: i32) -> (i32, i32) {
    %c0_i32 = arith.constant 0 : i32
    return %arg0, %arg1 : i32, i32
  }
}

module attributes {stable_mosaic.version = 11 : i64} {
  func.func @_matmul_bias_kernel(%arg0: i32, %arg1: i32, %arg2: i32, %arg3: memref<16x128xbf16, #tpu.memory_space<vmem>>, %arg4: memref<128x128xbf16, #tpu.memory_space<vmem>>, %arg5: memref<1x128xf32, #tpu.memory_space<vmem>>, %arg6: memref<16x128xf32, #tpu.memory_space<vmem>>, %arg7: memref<16x128xf32, #tpu.memory_space<vmem>>) attributes {dimension_semantics = [#tpu.dimension_semantics<parallel>, #tpu.dimension_semantics<parallel>, #tpu.dimension_semantics<arbitrary>], iteration_bounds = array<i64: 1, 1, 5>, scalar_prefetch = 0 : i64, scratch_operands = 1 : i64, tpu.core_type = #tpu.core_type<tc>, window_params = [{transform_indices = @transform_0, window_bounds = array<i64: 16, 128>}, {transform_indices = @transform_1, window_bounds = array<i64: 128, 128>}, {transform_indices = @transform_2, window_bounds = array<i64: 1, 128>}, {transform_indices = @transform_3, window_bounds = array<i64: 16, 128>}]} {
    %c0_i32 = arith.constant 0 : i32
    %0 = arith.cmpi eq, %arg2, %c0_i32 : i32
    %1 = arith.extui %0 : i1 to i32
    %c0_i32_0 = arith.constant 0 : i32
    %2 = arith.cmpi ne, %1, %c0_i32_0 : i32
    scf.if %2 {
      %cst_9 = arith.constant 0.000000e+00 : f32
      %12 = vector.broadcast %cst_9 : f32 to vector<16x128xf32>
      %c0_10 = arith.constant 0 : index
      %c0_11 = arith.constant 0 : index
      %13 = vector.load %arg7[%c0_10, %c0_11] : memref<16x128xf32, #tpu.memory_space<vmem>>, vector<16x128xf32>
      tpu.vector_store %arg7[%c0_10, %c0_11], %12 {strides = array<i32>} : memref<16x128xf32, #tpu.memory_space<vmem>>, vector<16x128xf32>,
    } else {
    }
    %c0 = arith.constant 0 : index
    %c0_1 = arith.constant 0 : index
    %3 = vector.load %arg7[%c0, %c0_1] : memref<16x128xf32, #tpu.memory_space<vmem>>, vector<16x128xf32>
    %c0_2 = arith.constant 0 : index
    %c0_3 = arith.constant 0 : index
    %4 = vector.load %arg3[%c0_2, %c0_3] : memref<16x128xbf16, #tpu.memory_space<vmem>>, vector<16x128xbf16>
    %c0_4 = arith.constant 0 : index
    %c0_5 = arith.constant 0 : index
    %5 = vector.load %arg4[%c0_4, %c0_5] : memref<128x128xbf16, #tpu.memory_space<vmem>>, vector<128x128xbf16>
    %cst = arith.constant dense<0.000000e+00> : vector<16x128xf32>
    %6 = tpu.matmul %4, %5, %cst {dimension_numbers = #tpu.dot_dimension_numbers<[1], [0], [0], [1], [0, 0, 1, 1], [], []>} : vector<16x128xbf16>, vector<128x128xbf16>, vector<16x128xf32> -> vector<16x128xf32>
    %7 = arith.addf %3, %6 : vector<16x128xf32>
    %c0_6 = arith.constant 0 : index
    %c0_7 = arith.constant 0 : index
    %8 = vector.load %arg7[%c0_6, %c0_7] : memref<16x128xf32, #tpu.memory_space<vmem>>, vector<16x128xf32>
    tpu.vector_store %arg7[%c0_6, %c0_7], %7 {strides = array<i32>} : memref<16x128xf32, #tpu.memory_space<vmem>>, vector<16x128xf32>,
    %c4_i32 = arith.constant 4 : i32
    %9 = arith.cmpi eq, %arg2, %c4_i32 : i32
    %10 = arith.extui %9 : i1 to i32
    %c0_i32_8 = arith.constant 0 : i32
    %11 = arith.cmpi ne, %10, %c0_i32_8 : i32
    scf.if %11 {
      %c0_9 = arith.constant 0 : index
      %c0_10 = arith.constant 0 : index
      %12 = vector.load %arg7[%c0_9, %c0_10] : memref<16x128xf32, #tpu.memory_space<vmem>>, vector<16x128xf32>
      %c0_11 = arith.constant 0 : index
      %c0_12 = arith.constant 0 : index
      %13 = vector.load %arg5[%c0_11, %c0_12] : memref<1x128xf32, #tpu.memory_space<vmem>>, vector<1x128xf32>
      %14 = vector.broadcast %13 : vector<1x128xf32> to vector<16x128xf32>
      %15 = arith.addf %12, %14 : vector<16x128xf32>
      %cst_13 = arith.constant 0.000000e+00 : f32
      %16 = vector.broadcast %cst_13 : f32 to vector<16x128xf32>
      %17 = arith.maximumf %15, %16 : vector<16x128xf32>
      %c0_14 = arith.constant 0 : index
      %c0_15 = arith.constant 0 : index
      %18 = vector.load %arg6[%c0_14, %c0_15] : memref<16x128xf32, #tpu.memory_space<vmem>>, vector<16x128xf32>
      tpu.vector_store %arg6[%c0_14, %c0_15], %17 {strides = array<i32>} : memref<16x128xf32, #tpu.memory_space<vmem>>, vector<16x128xf32>,
    } else {
    }
    return
  }
  func.func @transform_0(%arg0: i32, %arg1: i32, %arg2: i32) -> (i32, i32) {
    %c0_i32 = arith.constant 0 : i32
    return %arg0, %arg2 : i32, i32
  }
  func.func @transform_1(%arg0: i32, %arg1: i32, %arg2: i32) -> (i32, i32) {
    %c0_i32 = arith.constant 0 : i32
    return %arg2, %arg1 : i32, i32
  }
  func.func @transform_2(%arg0: i32, %arg1: i32, %arg2: i32) -> (i32, i32) {
    %c0_i32 = arith.constant 0 : i32
    %c0_i32_0 = arith.constant 0 : i32
    return %c0_i32, %arg1 : i32, i32
  }
  func.func @transform_3(%arg0: i32, %arg1: i32, %arg2: i32) -> (i32, i32) {
    %c0_i32 = arith.constant 0 : i32
    return %arg0, %arg1 : i32, i32
  }
}

module attributes {stable_mosaic.version = 11 : i64} {
  func.func @_matmul_bias_kernel(%arg0: i32, %arg1: i32, %arg2: i32, %arg3: memref<16x128xbf16, #tpu.memory_space<vmem>>, %arg4: memref<128x256xbf16, #tpu.memory_space<vmem>>, %arg5: memref<1x256xf32, #tpu.memory_space<vmem>>, %arg6: memref<16x256xf32, #tpu.memory_space<vmem>>, %arg7: memref<16x256xf32, #tpu.memory_space<vmem>>) attributes {dimension_semantics = [#tpu.dimension_semantics<parallel>, #tpu.dimension_semantics<parallel>, #tpu.dimension_semantics<arbitrary>], iteration_bounds = array<i64: 1, 2, 1>, scalar_prefetch = 0 : i64, scratch_operands = 1 : i64, tpu.core_type = #tpu.core_type<tc>, window_params = [{transform_indices = @transform_0, window_bounds = array<i64: 16, 128>}, {transform_indices = @transform_1, window_bounds = array<i64: 128, 256>}, {transform_indices = @transform_2, window_bounds = array<i64: 1, 256>}, {transform_indices = @transform_3, window_bounds = array<i64: 16, 256>}]} {
    %c0_i32 = arith.constant 0 : i32
    %0 = arith.cmpi eq, %arg2, %c0_i32 : i32
    %1 = arith.extui %0 : i1 to i32
    %c0_i32_0 = arith.constant 0 : i32
    %2 = arith.cmpi ne, %1, %c0_i32_0 : i32
    scf.if %2 {
      %cst_10 = arith.constant 0.000000e+00 : f32
      %12 = vector.broadcast %cst_10 : f32 to vector<16x256xf32>
      %c0_11 = arith.constant 0 : index
      %c0_12 = arith.constant 0 : index
      %13 = vector.load %arg7[%c0_11, %c0_12] : memref<16x256xf32, #tpu.memory_space<vmem>>, vector<16x256xf32>
      tpu.vector_store %arg7[%c0_11, %c0_12], %12 {strides = array<i32>} : memref<16x256xf32, #tpu.memory_space<vmem>>, vector<16x256xf32>,
    } else {
    }
    %c0 = arith.constant 0 : index
    %c0_1 = arith.constant 0 : index
    %3 = vector.load %arg7[%c0, %c0_1] : memref<16x256xf32, #tpu.memory_space<vmem>>, vector<16x256xf32>
    %c0_2 = arith.constant 0 : index
    %c0_3 = arith.constant 0 : index
    %4 = vector.load %arg3[%c0_2, %c0_3] : memref<16x128xbf16, #tpu.memory_space<vmem>>, vector<16x128xbf16>
    %c0_4 = arith.constant 0 : index
    %c0_5 = arith.constant 0 : index
    %5 = vector.load %arg4[%c0_4, %c0_5] : memref<128x256xbf16, #tpu.memory_space<vmem>>, vector<128x256xbf16>
    %cst = arith.constant dense<0.000000e+00> : vector<16x256xf32>
    %6 = tpu.matmul %4, %5, %cst {dimension_numbers = #tpu.dot_dimension_numbers<[1], [0], [0], [1], [0, 0, 1, 1], [], []>} : vector<16x128xbf16>, vector<128x256xbf16>, vector<16x256xf32> -> vector<16x256xf32>
    %7 = arith.addf %3, %6 : vector<16x256xf32>
    %c0_6 = arith.constant 0 : index
    %c0_7 = arith.constant 0 : index
    %8 = vector.load %arg7[%c0_6, %c0_7] : memref<16x256xf32, #tpu.memory_space<vmem>>, vector<16x256xf32>
    tpu.vector_store %arg7[%c0_6, %c0_7], %7 {strides = array<i32>} : memref<16x256xf32, #tpu.memory_space<vmem>>, vector<16x256xf32>,
    %c0_i32_8 = arith.constant 0 : i32
    %9 = arith.cmpi eq, %arg2, %c0_i32_8 : i32
    %10 = arith.extui %9 : i1 to i32
    %c0_i32_9 = arith.constant 0 : i32
    %11 = arith.cmpi ne, %10, %c0_i32_9 : i32
    scf.if %11 {
      %c0_10 = arith.constant 0 : index
      %c0_11 = arith.constant 0 : index
      %12 = vector.load %arg7[%c0_10, %c0_11] : memref<16x256xf32, #tpu.memory_space<vmem>>, vector<16x256xf32>
      %c0_12 = arith.constant 0 : index
      %c0_13 = arith.constant 0 : index
      %13 = vector.load %arg5[%c0_12, %c0_13] : memref<1x256xf32, #tpu.memory_space<vmem>>, vector<1x256xf32>
      %14 = vector.broadcast %13 : vector<1x256xf32> to vector<16x256xf32>
      %15 = arith.addf %12, %14 : vector<16x256xf32>
      %cst_14 = arith.constant 0.000000e+00 : f32
      %16 = vector.broadcast %cst_14 : f32 to vector<16x256xf32>
      %17 = arith.maximumf %15, %16 : vector<16x256xf32>
      %c0_15 = arith.constant 0 : index
      %c0_16 = arith.constant 0 : index
      %18 = vector.load %arg6[%c0_15, %c0_16] : memref<16x256xf32, #tpu.memory_space<vmem>>, vector<16x256xf32>
      tpu.vector_store %arg6[%c0_15, %c0_16], %17 {strides = array<i32>} : memref<16x256xf32, #tpu.memory_space<vmem>>, vector<16x256xf32>,
    } else {
    }
    return
  }
  func.func @transform_0(%arg0: i32, %arg1: i32, %arg2: i32) -> (i32, i32) {
    %c0_i32 = arith.constant 0 : i32
    return %arg0, %arg2 : i32, i32
  }
  func.func @transform_1(%arg0: i32, %arg1: i32, %arg2: i32) -> (i32, i32) {
    %c0_i32 = arith.constant 0 : i32
    return %arg2, %arg1 : i32, i32
  }
  func.func @transform_2(%arg0: i32, %arg1: i32, %arg2: i32) -> (i32, i32) {
    %c0_i32 = arith.constant 0 : i32
    %c0_i32_0 = arith.constant 0 : i32
    return %c0_i32, %arg1 : i32, i32
  }
  func.func @transform_3(%arg0: i32, %arg1: i32, %arg2: i32) -> (i32, i32) {
    %c0_i32 = arith.constant 0 : i32
    return %arg0, %arg1 : i32, i32
  }
}

module attributes {stable_mosaic.version = 11 : i64} {
  func.func @_matmul_bias_kernel(%arg0: i32, %arg1: i32, %arg2: i32, %arg3: memref<16x512xbf16, #tpu.memory_space<vmem>>, %arg4: memref<512x128xbf16, #tpu.memory_space<vmem>>, %arg5: memref<1x128xf32, #tpu.memory_space<vmem>>, %arg6: memref<16x128xf32, #tpu.memory_space<vmem>>, %arg7: memref<16x128xf32, #tpu.memory_space<vmem>>) attributes {dimension_semantics = [#tpu.dimension_semantics<parallel>, #tpu.dimension_semantics<parallel>, #tpu.dimension_semantics<arbitrary>], iteration_bounds = array<i64: 1, 1, 1>, scalar_prefetch = 0 : i64, scratch_operands = 1 : i64, tpu.core_type = #tpu.core_type<tc>, window_params = [{transform_indices = @transform_0, window_bounds = array<i64: 16, 512>}, {transform_indices = @transform_1, window_bounds = array<i64: 512, 128>}, {transform_indices = @transform_2, window_bounds = array<i64: 1, 128>}, {transform_indices = @transform_3, window_bounds = array<i64: 16, 128>}]} {
    %c0_i32 = arith.constant 0 : i32
    %0 = arith.cmpi eq, %arg2, %c0_i32 : i32
    %1 = arith.extui %0 : i1 to i32
    %c0_i32_0 = arith.constant 0 : i32
    %2 = arith.cmpi ne, %1, %c0_i32_0 : i32
    scf.if %2 {
      %cst_10 = arith.constant 0.000000e+00 : f32
      %12 = vector.broadcast %cst_10 : f32 to vector<16x128xf32>
      %c0_11 = arith.constant 0 : index
      %c0_12 = arith.constant 0 : index
      %13 = vector.load %arg7[%c0_11, %c0_12] : memref<16x128xf32, #tpu.memory_space<vmem>>, vector<16x128xf32>
      tpu.vector_store %arg7[%c0_11, %c0_12], %12 {strides = array<i32>} : memref<16x128xf32, #tpu.memory_space<vmem>>, vector<16x128xf32>,
    } else {
    }
    %c0 = arith.constant 0 : index
    %c0_1 = arith.constant 0 : index
    %3 = vector.load %arg7[%c0, %c0_1] : memref<16x128xf32, #tpu.memory_space<vmem>>, vector<16x128xf32>
    %c0_2 = arith.constant 0 : index
    %c0_3 = arith.constant 0 : index
    %4 = vector.load %arg3[%c0_2, %c0_3] : memref<16x512xbf16, #tpu.memory_space<vmem>>, vector<16x512xbf16>
    %c0_4 = arith.constant 0 : index
    %c0_5 = arith.constant 0 : index
    %5 = vector.load %arg4[%c0_4, %c0_5] : memref<512x128xbf16, #tpu.memory_space<vmem>>, vector<512x128xbf16>
    %cst = arith.constant dense<0.000000e+00> : vector<16x128xf32>
    %6 = tpu.matmul %4, %5, %cst {dimension_numbers = #tpu.dot_dimension_numbers<[1], [0], [0], [1], [0, 0, 1, 1], [], []>} : vector<16x512xbf16>, vector<512x128xbf16>, vector<16x128xf32> -> vector<16x128xf32>
    %7 = arith.addf %3, %6 : vector<16x128xf32>
    %c0_6 = arith.constant 0 : index
    %c0_7 = arith.constant 0 : index
    %8 = vector.load %arg7[%c0_6, %c0_7] : memref<16x128xf32, #tpu.memory_space<vmem>>, vector<16x128xf32>
    tpu.vector_store %arg7[%c0_6, %c0_7], %7 {strides = array<i32>} : memref<16x128xf32, #tpu.memory_space<vmem>>, vector<16x128xf32>,
    %c0_i32_8 = arith.constant 0 : i32
    %9 = arith.cmpi eq, %arg2, %c0_i32_8 : i32
    %10 = arith.extui %9 : i1 to i32
    %c0_i32_9 = arith.constant 0 : i32
    %11 = arith.cmpi ne, %10, %c0_i32_9 : i32
    scf.if %11 {
      %c0_10 = arith.constant 0 : index
      %c0_11 = arith.constant 0 : index
      %12 = vector.load %arg7[%c0_10, %c0_11] : memref<16x128xf32, #tpu.memory_space<vmem>>, vector<16x128xf32>
      %c0_12 = arith.constant 0 : index
      %c0_13 = arith.constant 0 : index
      %13 = vector.load %arg5[%c0_12, %c0_13] : memref<1x128xf32, #tpu.memory_space<vmem>>, vector<1x128xf32>
      %14 = vector.broadcast %13 : vector<1x128xf32> to vector<16x128xf32>
      %15 = arith.addf %12, %14 : vector<16x128xf32>
      %c0_14 = arith.constant 0 : index
      %c0_15 = arith.constant 0 : index
      %16 = vector.load %arg6[%c0_14, %c0_15] : memref<16x128xf32, #tpu.memory_space<vmem>>, vector<16x128xf32>
      tpu.vector_store %arg6[%c0_14, %c0_15], %15 {strides = array<i32>} : memref<16x128xf32, #tpu.memory_space<vmem>>, vector<16x128xf32>,
    } else {
    }
    return
  }
  func.func @transform_0(%arg0: i32, %arg1: i32, %arg2: i32) -> (i32, i32) {
    %c0_i32 = arith.constant 0 : i32
    return %arg0, %arg2 : i32, i32
  }
  func.func @transform_1(%arg0: i32, %arg1: i32, %arg2: i32) -> (i32, i32) {
    %c0_i32 = arith.constant 0 : i32
    return %arg2, %arg1 : i32, i32
  }
  func.func @transform_2(%arg0: i32, %arg1: i32, %arg2: i32) -> (i32, i32) {
    %c0_i32 = arith.constant 0 : i32
    %c0_i32_0 = arith.constant 0 : i32
    return %c0_i32, %arg1 : i32, i32
  }
  func.func @transform_3(%arg0: i32, %arg1: i32, %arg2: i32) -> (i32, i32) {
    %c0_i32 = arith.constant 0 : i32
    return %arg0, %arg1 : i32, i32
  }
}

</mosaic_0001>

<bundles_post_ra>
// kernel: dqn_forward.5
= control target key start
LH: loop header
LB: loop body
LE: loop exit
PB: predicated region body
PF: predicated region fallthrough
CT: control target
= control target key end

     0   :  { %s820_s1 = inlined_call_operand.vmem [shape: bf16[256,128], index: 1, kind: input, shape index: {}]   ;;  %s821_s0 = inlined_call_operand.vmem [shape: bf16[128,256], index: 0, kind: input, shape index: {}]   ;;  %s822_s2 = inlined_call_operand.vmem [shape: f32[1,128], index: 2, kind: input, shape index: {}]   ;;  %s823_s3 = inlined_call_operand.vmem [shape: f32[128,128], index: 3, kind: output, shape index: {}]  }
   0x1   :  { %v595_v0 = vld [vmem:[%s820_s1 + $0x40] sm:$0xff]   ;;  %v597_v2 = vld [vmem:[%s820_s1 + $0x48] sm:$0xff]   ;;  %v599_v4 = vld [vmem:[%s820_s1 + $0x50] sm:$0xff]  }
   0x2   :  { %v596_v1 = vld [vmem:[%s820_s1] sm:$0xff]   ;;  %515 = vmatprep.subr.bf16.mxu0 %v595_v0  ;;  %579 = vmatprep.subr.bf16.mxu1 %v595_v0  ;;  %v598_v3 = vld [vmem:[%s820_s1 + $0x8] sm:$0xff]   ;;  %v600_v5 = vld [vmem:[%s820_s1 + $0x10] sm:$0xff]  }
   0x3   :  { %516 = vmatpush3.bf16.msra.mxu0 %v596_v1  ;;  %587 = vmatpush3.bf16.msra.mxu1 %v596_v1  ;;  %v601_v6 = vld [vmem:[%s820_s1 + $0x58] sm:$0xff]   ;;  %v603_v8 = vld [vmem:[%s820_s1 + $0x60] sm:$0xff]   ;;  %v605_v10 = vld [vmem:[%s820_s1 + $0x68] sm:$0xff]  }
   0x4   :  { %517 = vmatprep.subr.bf16.mxu0 %v597_v2  ;;  %580 = vmatprep.subr.bf16.mxu1 %v597_v2  ;;  %v602_v7 = vld [vmem:[%s820_s1 + $0x18] sm:$0xff]   ;;  %v604_v9 = vld [vmem:[%s820_s1 + $0x20] sm:$0xff]   ;;  %v606_v13 = vld [vmem:[%s820_s1 + $0x28] sm:$0xff]  }
   0x5   :  { %v613_v11 = vld [vmem:[%s821_s0 + $0x4] ss:$8 sps:$4 sm:$0xff]   ;;  %v607_v14 = vld [vmem:[%s820_s1 + $0x70] sm:$0xff]   ;;  %v609_v16 = vld [vmem:[%s820_s1 + $0x78] sm:$0xff]  }
   0x6   :  { %v616_v12 = vld [vmem:[%s821_s0 + $0x44] ss:$8 sps:$4 sm:$0xff]   ;;  %307 = vmatprep.mubr.bf16.mxu0 %v613_v11  ;;  %v608_v15 = vld [vmem:[%s820_s1 + $0x30] sm:$0xff]   ;;  %v610_v17 = vld [vmem:[%s820_s1 + $0x38] sm:$0xff]  }
   0x7   :  { %518 = vmatpush3.bf16.msra.mxu0 %v598_v3  ;;  %588 = vmatpush3.bf16.msra.mxu1 %v598_v3  ;;  %v611_v18 = vld [vmem:[%s821_s0] ss:$8 sps:$4 sm:$0xff]   ;;  %v617_v20 = vld [vmem:[%s821_s0 + $0x14] ss:$8 sps:$4 sm:$0xff]   ;;  %v621_v22 = vld [vmem:[%s821_s0 + $0x10] ss:$8 sps:$4 sm:$0xff]  }
   0x8   :  { %519 = vmatprep.subr.bf16.mxu0 %v599_v4  ;;  %581 = vmatprep.subr.bf16.mxu1 %v599_v4  ;;  %v614_v19 = vld [vmem:[%s821_s0 + $0x40] ss:$8 sps:$4 sm:$0xff]   ;;  %v619_v21 = vld [vmem:[%s821_s0 + $0x54] ss:$8 sps:$4 sm:$0xff]   ;;  %v622_v23 = vld [vmem:[%s821_s0 + $0x50] ss:$8 sps:$4 sm:$0xff]  }
   0x9   :  { %339 = vmatprep.mubr.bf16.mxu1 %v616_v12  ;;  %v623_v24 = vld [vmem:[%s821_s0 + $0x24] ss:$8 sps:$4 sm:$0xff]   ;;  %v627_v26 = vld [vmem:[%s821_s0 + $0x20] ss:$8 sps:$4 sm:$0xff]   ;;  %v629_v28 = vld [vmem:[%s821_s0 + $0x34] ss:$8 sps:$4 sm:$0xff]  }
   0xa   :  { %v625_v25 = vld [vmem:[%s821_s0 + $0x64] ss:$8 sps:$4 sm:$0xff]   ;;  %v628_v27 = vld [vmem:[%s821_s0 + $0x60] ss:$8 sps:$4 sm:$0xff]   ;;  %v631_v29 = vld [vmem:[%s821_s0 + $0x74] ss:$8 sps:$4 sm:$0xff]  }
   0xb   :  { %520 = vmatpush3.bf16.msra.mxu0 %v600_v5  ;;  %589 = vmatpush3.bf16.msra.mxu1 %v600_v5  ;;  %v633_v30 = vld [vmem:[%s821_s0 + $0x30] ss:$8 sps:$4 sm:$0xff]   ;;  %v754_v35 = vld [vmem:[%s822_s2] ss:$0 sm:$0xff] }
   0xc   :  { %521 = vmatprep.subr.bf16.mxu0 %v601_v6  ;;  %582 = vmatprep.subr.bf16.mxu1 %v601_v6  ;;  %v634_v31 = vld [vmem:[%s821_s0 + $0x70] ss:$8 sps:$4 sm:$0xff]  }
   0xf   :  { %522 = vmatpush3.bf16.msra.mxu0 %v602_v7  ;;  %590 = vmatpush3.bf16.msra.mxu1 %v602_v7 }
  0x10   :  { %523 = vmatprep.subr.bf16.mxu0 %v603_v8  ;;  %583 = vmatprep.subr.bf16.mxu1 %v603_v8 }
  0x13   :  { %524 = vmatpush3.bf16.msra.mxu0 %v604_v9  ;;  %591 = vmatpush3.bf16.msra.mxu1 %v604_v9 }
  0x14   :  { %525 = vmatprep.subr.bf16.mxu0 %v605_v10  ;;  %584 = vmatprep.subr.bf16.mxu1 %v605_v10 }
  0x17   :  { %526 = vmatpush3.bf16.msra.mxu0 %v606_v13  ;;  %592 = vmatpush3.bf16.msra.mxu1 %v606_v13 }
  0x18   :  { %527 = vmatprep.subr.bf16.mxu0 %v607_v14  ;;  %585 = vmatprep.subr.bf16.mxu1 %v607_v14 }
  0x1b   :  { %528 = vmatpush3.bf16.msra.mxu0 %v608_v15  ;;  %593 = vmatpush3.bf16.msra.mxu1 %v608_v15 }
  0x1c   :  { %529 = vmatprep.subr.bf16.mxu0 %v609_v16  ;;  %586 = vmatprep.subr.bf16.mxu1 %v609_v16 }
  0x1f   :  { %530 = vmatpush3.bf16.msra.mxu0 %v610_v17  ;;  %594 = vmatpush3.bf16.msra.mxu1 %v610_v17 }
  0x22   :  { %308 = vmatmul.mubr.bf16.vlgmr.msra.gmra.mrb[0].mxu0 %v611_v18  ;;  %340 = vmatmul.mubr.bf16.vlgmr.msra.gmra.mrb[0].mxu1 %v614_v19 }
  0x23   :  { %315 = vmatprep.mubr.bf16.mxu0 %v617_v20  ;;  %347 = vmatprep.mubr.bf16.mxu1 %v619_v21 }
  0x2a   :  { %316 = vmatmul.mubr.bf16.gmra.mrb[4].mxu0 %v621_v22  ;;  %348 = vmatmul.mubr.bf16.gmra.mrb[4].mxu1 %v622_v23 }
  0x2b   :  { %323 = vmatprep.mubr.bf16.mxu0 %v623_v24  ;;  %355 = vmatprep.mubr.bf16.mxu1 %v625_v25 }
  0x32   :  { %324 = vmatmul.mubr.bf16.gmra.mrb[8].mxu0 %v627_v26  ;;  %356 = vmatmul.mubr.bf16.gmra.mrb[8].mxu1 %v628_v27 }
  0x33   :  { %331 = vmatprep.mubr.bf16.mxu0 %v629_v28  ;;  %363 = vmatprep.mubr.bf16.mxu1 %v631_v29 }
  0x3a   :  { %332 = vmatmul.mubr.bf16.gmra.mrb[12].mxu0 %v633_v30  ;;  %364 = vmatmul.mubr.bf16.gmra.mrb[12].mxu1 %v634_v31 }
  0xf5   :  { %v531_v32 = vpop.f32.mrb[0].mxu0  ;;  %v555_v33 = vpop.f32.mrb[0].mxu1 }
  0xf6   :  { %v532_v34 = vpop.f32.mrb[1].mxu0  ;;  %v556_v36 = vpop.f32.mrb[1].mxu1 }
  0xf7   :  { %v533_v37 = vadd.f32 %v532_v34, %v531_v32  ;;  %v557_v38 = vadd.f32 %v556_v36, %v555_v33  ;;  %v534_v39 = vpop.f32.mrb[2].mxu0  ;;  %v558_v40 = vpop.f32.mrb[2].mxu1 }
  0xf8   :  { %v535_v41 = vpop.f32.mrb[3].mxu0  ;;  %v559_v42 = vpop.f32.mrb[3].mxu1 }
  0xf9   :  { %v430_v43 = vadd.f32 %v533_v37, %v754_v35  ;;  %v438_v44 = vadd.f32 %v557_v38, %v754_v35  ;;  %v536_v45 = vadd.f32 %v535_v41, %v534_v39  ;;  %v560_v46 = vadd.f32 %v559_v42, %v558_v40 }
  0xfb   :  { %v446_v47 = vmax.f32 %v430_v43, 0.0  ;;  %v454_v48 = vmax.f32 %v438_v44, 0.0  ;;  %v431_v49 = vadd.f32 %v536_v45, %v754_v35  ;;  %v439_v50 = vadd.f32 %v560_v46, %v754_v35 }
  0xfd   :  { %462 = vst [vmem:[%s823_s3] sm:$0xff] %v446_v47  ;;  %470 = vst [vmem:[%s823_s3 + $0x40] sm:$0xff] %v454_v48  ;;  %v447_v51 = vmax.f32 %v431_v49, 0.0  ;;  %v455_v52 = vmax.f32 %v439_v50, 0.0  ;;  %v537_v53 = vpop.f32.mrb[4].mxu0  ;;  %v561_v54 = vpop.f32.mrb[4].mxu1 }
  0xfe   :  { %v538_v55 = vpop.f32.mrb[5].mxu0  ;;  %v562_v56 = vpop.f32.mrb[5].mxu1 }
  0xff   :  { %463 = vst [vmem:[%s823_s3 + $0x8] sm:$0xff] %v447_v51  ;;  %471 = vst [vmem:[%s823_s3 + $0x48] sm:$0xff] %v455_v52  ;;  %v539_v57 = vadd.f32 %v538_v55, %v537_v53  ;;  %v563_v58 = vadd.f32 %v562_v56, %v561_v54  ;;  %v540_v59 = vpop.f32.mrb[6].mxu0  ;;  %v564_v60 = vpop.f32.mrb[6].mxu1 }
 0x100   :  { %v541_v61 = vpop.f32.mrb[7].mxu0  ;;  %v565_v62 = vpop.f32.mrb[7].mxu1 }
 0x101   :  { %v432_v63 = vadd.f32 %v539_v57, %v754_v35  ;;  %v440_v0 = vadd.f32 %v563_v58, %v754_v35  ;;  %v542_v1 = vadd.f32 %v541_v61, %v540_v59  ;;  %v566_v2 = vadd.f32 %v565_v62, %v564_v60 }
 0x103   :  { %v448_v3 = vmax.f32 %v432_v63, 0.0  ;;  %v456_v4 = vmax.f32 %v440_v0, 0.0  ;;  %v433_v5 = vadd.f32 %v542_v1, %v754_v35  ;;  %v441_v6 = vadd.f32 %v566_v2, %v754_v35 }
 0x105   :  { %464 = vst [vmem:[%s823_s3 + $0x10] sm:$0xff] %v448_v3  ;;  %472 = vst [vmem:[%s823_s3 + $0x50] sm:$0xff] %v456_v4  ;;  %v449_v7 = vmax.f32 %v433_v5, 0.0  ;;  %v457_v8 = vmax.f32 %v441_v6, 0.0  ;;  %v543_v9 = vpop.f32.mrb[8].mxu0  ;;  %v567_v10 = vpop.f32.mrb[8].mxu1 }
 0x106   :  { %v544_v11 = vpop.f32.mrb[9].mxu0  ;;  %v568_v12 = vpop.f32.mrb[9].mxu1 }
 0x107   :  { %465 = vst [vmem:[%s823_s3 + $0x18] sm:$0xff] %v449_v7  ;;  %473 = vst [vmem:[%s823_s3 + $0x58] sm:$0xff] %v457_v8  ;;  %v545_v13 = vadd.f32 %v544_v11, %v543_v9  ;;  %v569_v14 = vadd.f32 %v568_v12, %v567_v10  ;;  %v546_v15 = vpop.f32.mrb[10].mxu0  ;;  %v570_v16 = vpop.f32.mrb[10].mxu1 }
 0x108   :  { %v547_v17 = vpop.f32.mrb[11].mxu0  ;;  %v571_v18 = vpop.f32.mrb[11].mxu1 }
 0x109   :  { %v434_v19 = vadd.f32 %v545_v13, %v754_v35  ;;  %v442_v20 = vadd.f32 %v569_v14, %v754_v35  ;;  %v548_v21 = vadd.f32 %v547_v17, %v546_v15  ;;  %v572_v22 = vadd.f32 %v571_v18, %v570_v16 }
 0x10b   :  { %v450_v23 = vmax.f32 %v434_v19, 0.0  ;;  %v458_v24 = vmax.f32 %v442_v20, 0.0  ;;  %v435_v25 = vadd.f32 %v548_v21, %v754_v35  ;;  %v443_v26 = vadd.f32 %v572_v22, %v754_v35 }
 0x10d   :  { %466 = vst [vmem:[%s823_s3 + $0x20] sm:$0xff] %v450_v23  ;;  %474 = vst [vmem:[%s823_s3 + $0x60] sm:$0xff] %v458_v24  ;;  %v451_v27 = vmax.f32 %v435_v25, 0.0  ;;  %v459_v28 = vmax.f32 %v443_v26, 0.0  ;;  %v549_v29 = vpop.f32.mrb[12].mxu0  ;;  %v573_v30 = vpop.f32.mrb[12].mxu1 }
 0x10e   :  { %v550_v31 = vpop.f32.mrb[13].mxu0  ;;  %v574_v32 = vpop.f32.mrb[13].mxu1 }
 0x10f   :  { %467 = vst [vmem:[%s823_s3 + $0x28] sm:$0xff] %v451_v27  ;;  %475 = vst [vmem:[%s823_s3 + $0x68] sm:$0xff] %v459_v28  ;;  %v551_v33 = vadd.f32 %v550_v31, %v549_v29  ;;  %v575_v34 = vadd.f32 %v574_v32, %v573_v30  ;;  %v552_v36 = vpop.f32.mrb[14].mxu0  ;;  %v576_v37 = vpop.f32.mrb[14].mxu1 }
 0x110   :  { %v553_v38 = vpop.f32.mrb[15].mxu0  ;;  %v577_v39 = vpop.f32.mrb[15].mxu1 }
 0x111   :  { %v436_v40 = vadd.f32 %v551_v33, %v754_v35  ;;  %v444_v41 = vadd.f32 %v575_v34, %v754_v35  ;;  %v554_v42 = vadd.f32 %v553_v38, %v552_v36  ;;  %v578_v43 = vadd.f32 %v577_v39, %v576_v37 }
 0x113   :  { %v452_v44 = vmax.f32 %v436_v40, 0.0  ;;  %v460_v45 = vmax.f32 %v444_v41, 0.0  ;;  %v437_v46 = vadd.f32 %v554_v42, %v754_v35  ;;  %v445_v47 = vadd.f32 %v578_v43, %v754_v35 }
 0x115   :  { %468 = vst [vmem:[%s823_s3 + $0x30] sm:$0xff] %v452_v44  ;;  %476 = vst [vmem:[%s823_s3 + $0x70] sm:$0xff] %v460_v45  ;;  %v453_v48 = vmax.f32 %v437_v46, 0.0  ;;  %v461_v49 = vmax.f32 %v445_v47, 0.0 }
 0x117   :  { %469 = vst [vmem:[%s823_s3 + $0x38] sm:$0xff] %v453_v48  ;;  %477 = vst [vmem:[%s823_s3 + $0x78] sm:$0xff] %v461_v49 }

// kernel: dqn_forward.7
= control target key start
LH: loop header
LB: loop body
LE: loop exit
PB: predicated region body
PF: predicated region fallthrough
CT: control target
= control target key end

     0   :  { %s722_s12 = smov 0   ;;  %s724_s13 = smov 0   ;;  %s813_s0 = inlined_call_operand.vmem [shape: bf16[16,640], index: 0, kind: input, shape index: {}]   ;;  %s814_s1 = inlined_call_operand.vmem [shape: bf16[640,128], index: 1, kind: input, shape index: {}]   ;;  %s815_s2 = inlined_call_operand.vmem [shape: f32[1,128], index: 2, kind: input, shape index: {}]   ;;  %s816_s3 = inlined_call_operand.vmem [shape: f32[16,128], index: 3, kind: output, shape index: {}]  }
   0x1   :  { %s726_s14 = smov 0   ;;  %s728_s15 = smov 0  }
   0x2   :  { %s730_s16 = smov 0  }
   0x3 LB: > { %s25_s17 = sadd.s32 1, %s693_s15  ;;  %p48_p1 = scmp.ne.s32.totalorder %s685_s13, %s681_s12  ;;  %s697_s16 = sphi %s730_s16, %s13_s16   ;;  %s693_s15 = sphi %s728_s15, %s820_s15   ;;  %s689_s14 = sphi %s726_s14, %s819_s14   ;;  %s685_s13 = sphi %s724_s13, %s818_s13   ;;  %s681_s12 = sphi %s722_s12, %s817_s12  }
   0x4   : > { %p26_p0 = scmp.ge.s32.totalorder %s25_s17, 5  ;;  %p49_p2 = scmp.eq.s32.totalorder %s697_s16, 0 }
   0x5   : > { %s41_s19 = sadd.s32 1, %s685_s13  ;;  %p555_p5 = scmp.ge.s32.totalorder %s697_s16, 5 }
   0x6   : > { %s822_s17 = smov (%p26_p0, %s25_s17), 0  ;;  %p50_p3 = por %p49_p2, %p48_p1 }
   0x7   : > { %s37_s18 = ssub.s32 %s693_s15, %s822_s17  ;;  %162 = sbr.rel (%p555_p5) target bundleno = 21 (0x15), region = 20 }
   0x8   : > { %p39_p4 = scmp.eq.s32.totalorder %s37_s18, 0 }
   0xa   : > { %s757_s20 = scalar_select %p39_p4, %s685_s13, %s41_s19  }
   0xe   : > { %165 = sbr.rel (!%p50_p3) target bundleno = 21 (0x15), region = 24  ;;  %s167_s21 = sand.u32 (%p50_p3), 1, %s685_s13  }
   0xf   : > { %s557_s22 = sshll.u32 (%p50_p3), %s693_s15, 2  ;;  %s556_s23 = sshll.u32 (%p50_p3), %s167_s21, 3 }
  0x10   : > { %s174_s26 = scalar_lea.vmem (%p50_p3), %s813_s0, %s557_s22  ;;  %s169_s27 = scalar_lea.vmem (%p50_p3), [#allocation3], %s556_s23 }
  0x11   : > { %v190_v0 = vld [vmem:[%s174_s26] sm:$0xf] (%p50_p3)  ;;  %v192_v1 = vld [vmem:[%s174_s26 + $0x14] sm:$0xf] (%p50_p3) }
  0x12   : > { %191 = vst [vmem:[%s169_s27] sm:$0xf] (%p50_p3), %v190_v0  ;;  %193 = vst [vmem:[%s169_s27 + $0x4] sm:$0xf] (%p50_p3), %v192_v1 }
  0x15 PF: > { %p558_p6 = scmp.ge.s32.totalorder %s697_s16, 1  ;;  %p231_p7 = scmp.lt.s32.totalorder %s697_s16, 6 }
  0x17   : > { %p232_p8 = pnand %p558_p6, %p231_p7 }
  0x18   : > { %s238_s28 = sand.u32 (!%p232_p8), 1, %s681_s12   ;;  %s560_s29 = sshll.u32 (!%p232_p8), %s689_s14, 4 }
  0x19   : > { %235 = sbr.rel (%p232_p8) target bundleno = 301 (0x12d), region = 69  ;;  %s769_s30 = sshll.u32 (!%p232_p8), %s238_s28, 3 }
  0x1a   : > { %p277_p9 = scmp.lt.s32.totalorder (!%p232_p8), %s560_s29, 79  ;;  %s240_s8 = scalar_lea.vmem (!%p232_p8), [#allocation3], %s769_s30 }
  0x1b   : > { %p562_p10 = scmp.ne.s32.totalorder (!%p232_p8), %s689_s14, 0 }
  0x20   : > { %s824_s29 = smov (!%p277_p9, %s560_s29), 79  ;;  %301 = sbr.rel (%p562_p10) target bundleno = 39 (0x27), region = 77 }
  0x21   : > { %s561_s4 = sshll.u32 %s824_s29, 2  ;;  %v699_v2 = vmov (!%p562_p10), 0.0  }
  0x22   : > { %s774_s7 = scalar_lea.vmem %s814_s1, %s561_s4  ;;  %302 = vst [vmem:[#allocation2] sm:$0xff] (!%p562_p10), %v699_v2  ;;  %303 = vst [vmem:[#allocation2 + $0x8] sm:$0xff] (!%p562_p10), %v699_v2 }
  0x27 PF: > { %v650_v3 = vld [vmem:[%s774_s7] sm:$0xff]   ;;  %v700_v4 = vmov 0.0   ;;  %v651_v5 = vld [vmem:[%s774_s7 + $0x8] sm:$0xff]   ;;  %vm701_vm0 = vmmov 0   ;;  %v652_v6 = vld [vmem:[%s774_s7 + $0x10] sm:$0xff]   ;;  %p572_p11 = scmp.ne.s32.totalorder %s689_s14, 4 }
  0x28   : > { %587 = vmatprep.subr.bf16.mxu0 %v700_v4  ;;  %603 = vmatprep.mubr.msk.bf16.mxu0 %vm701_vm0, %v700_v4  ;;  %v653_v7 = vld [vmem:[%s774_s7 + $0x18] sm:$0xff]   ;;  %v654_v8 = vld [vmem:[%s774_s7 + $0x20] sm:$0xff]   ;;  %v655_v9 = vld [vmem:[%s774_s7 + $0x28] sm:$0xff]  }
  0x29   : > { %588 = vmatpush3.bf16.msra.mxu0 %v650_v3  ;;  %v656_v10 = vld [vmem:[%s774_s7 + $0x30] sm:$0xff]   ;;  %v657_v11 = vld [vmem:[%s774_s7 + $0x38] sm:$0xff]   ;;  %v304_v13 = vld [vmem:[#allocation2] sm:$0xff] }
  0x2a   : > { %589 = vmatprep.subr.bf16.mxu0 %v700_v4  ;;  %v658_v12 = vld [vmem:[%s240_s8] sm:$0xff]   ;;  %v305_v15 = vld [vmem:[#allocation2 + $0x8] sm:$0xff]  ;;  %v573_v22 = vld [vmem:[%s815_s2] ss:$0 sm:$0xff] (!%p572_p11) }
  0x2d   : > { %590 = vmatpush3.bf16.msra.mxu0 %v651_v5 }
  0x2e   : > { %591 = vmatprep.subr.bf16.mxu0 %v700_v4 }
  0x31   : > { %592 = vmatpush3.bf16.msra.mxu0 %v652_v6 }
  0x32   : > { %593 = vmatprep.subr.bf16.mxu0 %v700_v4 }
  0x35   : > { %594 = vmatpush3.bf16.msra.mxu0 %v653_v7 }
  0x36   : > { %595 = vmatprep.subr.bf16.mxu0 %v700_v4 }
  0x39   : > { %596 = vmatpush3.bf16.msra.mxu0 %v654_v8 }
  0x3a   : > { %597 = vmatprep.subr.bf16.mxu0 %v700_v4 }
  0x3d   : > { %598 = vmatpush3.bf16.msra.mxu0 %v655_v9 }
  0x3e   : > { %599 = vmatprep.subr.bf16.mxu0 %v700_v4 }
  0x41   : > { %600 = vmatpush3.bf16.msra.mxu0 %v656_v10 }
  0x42   : > { %601 = vmatprep.subr.bf16.mxu0 %v700_v4 }
  0x45   : > { %602 = vmatpush3.bf16.msra.mxu0 %v657_v11 }
  0x48   : > { %604 = vmatmul.mubr.bf16.vlgmr.msra.gmra.mrb[0].mxu0 %v658_v12 }
 0x11a   : > { %426 = sbr.rel (%p572_p11) target bundleno = 301 (0x12d), region = 81 }
 0x11b   : > { %v412_v14 = vpop.f32.mrb[0].mxu0 }
 0x11c   : > { %v419_v16 = vadd.f32 %v412_v14, %v304_v13  ;;  %v605_v17 = vpop.f32.mrb[1].mxu0 }
 0x11d   : > { %v415_v18 = vpop.f32.mrb[2].mxu0 }
 0x11e   : > { %421 = vst [vmem:[#allocation2] sm:$0xff] %v419_v16  ;;  %v420_v19 = vadd.f32 %v415_v18, %v305_v15  ;;  %v606_v20 = vpop.f32.mrb[3].mxu0 }
 0x120   : > { %422 = vst [vmem:[#allocation2 + $0x8] sm:$0xff] %v420_v19 }
 0x125   : > { %v427_v21 = vld [vmem:[#allocation2] sm:$0xff] }
 0x126   : > { %v436_v24 = vadd.f32 %v573_v22, %v427_v21 }
 0x127   : > { %v428_v23 = vld [vmem:[#allocation2 + $0x8] sm:$0xff] }
 0x128   : > { %v437_v25 = vadd.f32 %v573_v22, %v428_v23  ;;  %v438_v26 = vmax.f32 %v436_v24, 0.0 }
 0x12a   : > { %v439_v27 = vmax.f32 %v437_v25, 0.0  ;;  %440 = vst [vmem:[%s816_s3] sm:$0xff] %v438_v26 }
 0x12c   : > { %441 = vst [vmem:[%s816_s3 + $0x8] sm:$0xff] %v439_v27 }
 0x12d PF: > { %s13_s16 = sadd.s32 1, %s697_s16   ;;  %s817_s12 = smov %s685_s13 }
 0x12e   : > { %p10_p12 = scmp.ge.s32.totalorder %s13_s16, 7   ;;  %s818_s13 = smov %s757_s20 }
 0x12f   : > { %s819_s14 = smov %s693_s15  ;;  %s820_s15 = smov %s822_s17 }
 0x130   :  { %12 = sbr.rel (!%p10_p12) target bundleno = 3 (0x3), region = 122 }

// kernel: dqn_forward.6
= control target key start
LH: loop header
LB: loop body
LE: loop exit
PB: predicated region body
PF: predicated region fallthrough
CT: control target
= control target key end

     0   :  { %s763_s1 = inlined_call_operand.vmem [shape: bf16[512,128], index: 1, kind: input, shape index: {}]   ;;  %s764_s0 = inlined_call_operand.vmem [shape: bf16[32,512], index: 0, kind: input, shape index: {}]   ;;  %s765_s2 = inlined_call_operand.vmem [shape: f32[1,128], index: 2, kind: input, shape index: {}]   ;;  %s766_s3 = inlined_call_operand.vmem [shape: f32[32,128], index: 3, kind: output, shape index: {}]  }
   0x1   :  { %v564_v0 = vld [vmem:[%s763_s1 + $0x40] sm:$0xff]   ;;  %v568_v4 = vld [vmem:[%s763_s1 + $0x48] sm:$0xff]   ;;  %v572_v8 = vld [vmem:[%s763_s1 + $0x50] sm:$0xff]  }
   0x2   :  { %v565_v1 = vld [vmem:[%s763_s1 + $0xc0] sm:$0xff]   ;;  %508 = vmatprep.subr.bf16.mxu0 %v564_v0  ;;  %v569_v5 = vld [vmem:[%s763_s1 + $0xc8] sm:$0xff]   ;;  %v573_v9 = vld [vmem:[%s763_s1 + $0xd0] sm:$0xff]  }
   0x3   :  { %v566_v2 = vld [vmem:[%s763_s1] sm:$0xff]   ;;  %536 = vmatprep.subr.bf16.mxu1 %v565_v1  ;;  %v570_v6 = vld [vmem:[%s763_s1 + $0x8] sm:$0xff]   ;;  %v574_v10 = vld [vmem:[%s763_s1 + $0x10] sm:$0xff]  }
   0x4   :  { %v567_v3 = vld [vmem:[%s763_s1 + $0x80] sm:$0xff]   ;;  %509 = vmatpush3.bf16.msra.mxu0 %v566_v2  ;;  %v571_v7 = vld [vmem:[%s763_s1 + $0x88] sm:$0xff]   ;;  %v575_v11 = vld [vmem:[%s763_s1 + $0x90] sm:$0xff]  }
   0x5   :  { %537 = vmatpush3.bf16.msra.mxu1 %v567_v3  ;;  %510 = vmatprep.subr.bf16.mxu0 %v568_v4  ;;  %v576_v12 = vld [vmem:[%s763_s1 + $0x58] sm:$0xff]   ;;  %v580_v16 = vld [vmem:[%s763_s1 + $0x60] sm:$0xff]   ;;  %v584_v20 = vld [vmem:[%s763_s1 + $0x68] sm:$0xff]  }
   0x6   :  { %538 = vmatprep.subr.bf16.mxu1 %v569_v5  ;;  %v577_v13 = vld [vmem:[%s763_s1 + $0xd8] sm:$0xff]   ;;  %v581_v17 = vld [vmem:[%s763_s1 + $0xe0] sm:$0xff]   ;;  %v585_v21 = vld [vmem:[%s763_s1 + $0xe8] sm:$0xff]  }
   0x7   :  { %v578_v14 = vld [vmem:[%s763_s1 + $0x18] sm:$0xff]   ;;  %v582_v18 = vld [vmem:[%s763_s1 + $0x20] sm:$0xff]   ;;  %v586_v22 = vld [vmem:[%s763_s1 + $0x28] sm:$0xff]  }
   0x8   :  { %511 = vmatpush3.bf16.msra.mxu0 %v570_v6  ;;  %v579_v15 = vld [vmem:[%s763_s1 + $0x98] sm:$0xff]   ;;  %v583_v19 = vld [vmem:[%s763_s1 + $0xa0] sm:$0xff]   ;;  %v587_v23 = vld [vmem:[%s763_s1 + $0xa8] sm:$0xff]  }
   0x9   :  { %539 = vmatpush3.bf16.msra.mxu1 %v571_v7  ;;  %512 = vmatprep.subr.bf16.mxu0 %v572_v8  ;;  %v588_v24 = vld [vmem:[%s763_s1 + $0x70] sm:$0xff]   ;;  %v592_v28 = vld [vmem:[%s763_s1 + $0x78] sm:$0xff]   ;;  %v507_v49 = vld [vmem:[%s765_s2] ss:$0 sm:$0xff] }
   0xa   :  { %540 = vmatprep.subr.bf16.mxu1 %v573_v9  ;;  %v589_v25 = vld [vmem:[%s763_s1 + $0xf0] sm:$0xff]   ;;  %v593_v29 = vld [vmem:[%s763_s1 + $0xf8] sm:$0xff]  }
   0xb   :  { %v590_v26 = vld [vmem:[%s763_s1 + $0x30] sm:$0xff]   ;;  %v594_v30 = vld [vmem:[%s763_s1 + $0x38] sm:$0xff]  }
   0xc   :  { %513 = vmatpush3.bf16.msra.mxu0 %v574_v10  ;;  %v591_v27 = vld [vmem:[%s763_s1 + $0xb0] sm:$0xff]   ;;  %v595_v31 = vld [vmem:[%s763_s1 + $0xb8] sm:$0xff]  }
   0xd   :  { %541 = vmatpush3.bf16.msra.mxu1 %v575_v11  ;;  %514 = vmatprep.subr.bf16.mxu0 %v576_v12  ;;  %v596_v32 = vld [vmem:[%s764_s0] ss:$16 sps:$4 sm:$0xff]   ;;  %v598_v33 = vld [vmem:[%s764_s0 + $0x4] ss:$16 sps:$4 sm:$0xff]   ;;  %v599_v34 = vld [vmem:[%s764_s0 + $0x8] ss:$16 sps:$4 sm:$0xff]  }
   0xe   :  { %542 = vmatprep.subr.bf16.mxu1 %v577_v13  ;;  %v601_v35 = vld [vmem:[%s764_s0 + $0xc] ss:$16 sps:$4 sm:$0xff]   ;;  %363 = vmatprep.mubr.bf16.mxu0 %v598_v33  ;;  %v602_v36 = vld [vmem:[%s764_s0 + $0x24] ss:$16 sps:$4 sm:$0xff]   ;;  %v606_v38 = vld [vmem:[%s764_s0 + $0x20] ss:$16 sps:$4 sm:$0xff]  }
   0xf   :  { %412 = vmatprep.mubr.bf16.mxu1 %v601_v35  ;;  %v604_v37 = vld [vmem:[%s764_s0 + $0x2c] ss:$16 sps:$4 sm:$0xff]   ;;  %v607_v39 = vld [vmem:[%s764_s0 + $0x28] ss:$16 sps:$4 sm:$0xff]  }
  0x10   :  { %515 = vmatpush3.bf16.msra.mxu0 %v578_v14 }
  0x11   :  { %543 = vmatpush3.bf16.msra.mxu1 %v579_v15  ;;  %516 = vmatprep.subr.bf16.mxu0 %v580_v16 }
  0x12   :  { %544 = vmatprep.subr.bf16.mxu1 %v581_v17 }
  0x14   :  { %517 = vmatpush3.bf16.msra.mxu0 %v582_v18 }
  0x15   :  { %545 = vmatpush3.bf16.msra.mxu1 %v583_v19  ;;  %518 = vmatprep.subr.bf16.mxu0 %v584_v20 }
  0x16   :  { %546 = vmatprep.subr.bf16.mxu1 %v585_v21 }
  0x18   :  { %519 = vmatpush3.bf16.msra.mxu0 %v586_v22 }
  0x19   :  { %547 = vmatpush3.bf16.msra.mxu1 %v587_v23  ;;  %520 = vmatprep.subr.bf16.mxu0 %v588_v24 }
  0x1a   :  { %548 = vmatprep.subr.bf16.mxu1 %v589_v25 }
  0x1c   :  { %521 = vmatpush3.bf16.msra.mxu0 %v590_v26 }
  0x1d   :  { %549 = vmatpush3.bf16.msra.mxu1 %v591_v27  ;;  %522 = vmatprep.subr.bf16.mxu0 %v592_v28 }
  0x1e   :  { %550 = vmatprep.subr.bf16.mxu1 %v593_v29 }
  0x20   :  { %523 = vmatpush3.bf16.msra.mxu0 %v594_v30 }
  0x21   :  { %551 = vmatpush3.bf16.msra.mxu1 %v595_v31 }
  0x23   :  { %364 = vmatmul.mubr.bf16.vlgmr.msra.gmra.mrb[0].mxu0 %v596_v32 }
  0x24   :  { %413 = vmatmul.mubr.bf16.vlgmr.msra.gmra.mrb[0].mxu1 %v599_v34  ;;  %371 = vmatprep.mubr.bf16.mxu0 %v602_v36 }
  0x25   :  { %420 = vmatprep.mubr.bf16.mxu1 %v604_v37 }
  0x2b   :  { %372 = vmatmul.mubr.bf16.gmra.mrb[4].mxu0 %v606_v38 }
  0x2c   :  { %421 = vmatmul.mubr.bf16.gmra.mrb[4].mxu1 %v607_v39 }
  0xf6   :  { %v524_v40 = vpop.f32.mrb[0].mxu0 }
  0xf7   :  { %v552_v41 = vpop.f32.mrb[0].mxu1  ;;  %v525_v42 = vpop.f32.mrb[1].mxu0 }
  0xf8   :  { %v526_v43 = vadd.f32 %v525_v42, %v524_v40  ;;  %v553_v44 = vpop.f32.mrb[1].mxu1  ;;  %v527_v45 = vpop.f32.mrb[2].mxu0 }
  0xf9   :  { %v554_v46 = vadd.f32 %v553_v44, %v552_v41  ;;  %v555_v47 = vpop.f32.mrb[2].mxu1  ;;  %v528_v48 = vpop.f32.mrb[3].mxu0 }
  0xfa   :  { %v529_v50 = vadd.f32 %v528_v48, %v527_v45  ;;  %v556_v51 = vpop.f32.mrb[3].mxu1 }
  0xfb   :  { %v415_v52 = vadd.f32 %v554_v46, %v526_v43  ;;  %v557_v53 = vadd.f32 %v556_v51, %v555_v47 }
  0xfd   :  { %v451_v54 = vadd.f32 %v507_v49, %v415_v52  ;;  %v418_v55 = vadd.f32 %v557_v53, %v529_v50 }
  0xfe   :  { %v530_v56 = vpop.f32.mrb[4].mxu0 }
  0xff   :  { %v455_v57 = vmax.f32 %v451_v54, 0.0  ;;  %v452_v58 = vadd.f32 %v507_v49, %v418_v55  ;;  %v558_v59 = vpop.f32.mrb[4].mxu1  ;;  %v531_v60 = vpop.f32.mrb[5].mxu0 }
 0x100   :  { %v532_v61 = vadd.f32 %v531_v60, %v530_v56  ;;  %v559_v62 = vpop.f32.mrb[5].mxu1  ;;  %v533_v63 = vpop.f32.mrb[6].mxu0 }
 0x101   :  { %459 = vst [vmem:[%s766_s3] sm:$0xff] %v455_v57  ;;  %v456_v0 = vmax.f32 %v452_v58, 0.0  ;;  %v560_v1 = vadd.f32 %v559_v62, %v558_v59  ;;  %v561_v2 = vpop.f32.mrb[6].mxu1  ;;  %v534_v3 = vpop.f32.mrb[7].mxu0 }
 0x102   :  { %v535_v4 = vadd.f32 %v534_v3, %v533_v63  ;;  %v562_v5 = vpop.f32.mrb[7].mxu1 }
 0x103   :  { %460 = vst [vmem:[%s766_s3 + $0x8] sm:$0xff] %v456_v0  ;;  %v423_v6 = vadd.f32 %v560_v1, %v532_v61  ;;  %v563_v7 = vadd.f32 %v562_v5, %v561_v2 }
 0x105   :  { %v453_v8 = vadd.f32 %v507_v49, %v423_v6  ;;  %v426_v9 = vadd.f32 %v563_v7, %v535_v4 }
 0x107   :  { %v457_v10 = vmax.f32 %v453_v8, 0.0  ;;  %v454_v11 = vadd.f32 %v507_v49, %v426_v9 }
 0x109   :  { %461 = vst [vmem:[%s766_s3 + $0x10] sm:$0xff] %v457_v10  ;;  %v458_v12 = vmax.f32 %v454_v11, 0.0 }
 0x10b   :  { %462 = vst [vmem:[%s766_s3 + $0x18] sm:$0xff] %v458_v12 }

// kernel: dqn_forward.8
= control target key start
LH: loop header
LB: loop body
LE: loop exit
PB: predicated region body
PF: predicated region fallthrough
CT: control target
= control target key end

     0   :  { %s841_s12 = smov 0   ;;  %s843_s13 = smov 0   ;;  %s942_s0 = inlined_call_operand.vmem [shape: bf16[16,128], index: 0, kind: input, shape index: {}]   ;;  %s943_s1 = inlined_call_operand.vmem [shape: bf16[128,512], index: 1, kind: input, shape index: {}]   ;;  %s944_s2 = inlined_call_operand.vmem [shape: f32[1,512], index: 2, kind: input, shape index: {}]   ;;  %s945_s3 = inlined_call_operand.vmem [shape: f32[16,512], index: 3, kind: output, shape index: {}]  }
   0x1   :  { %s845_s14 = smov 0   ;;  %s847_s15 = smov 0  }
   0x2   :  { %s849_s16 = smov 0  }
   0x3 LB: > { %s28_s17 = sadd.s32 1, %s814_s15  ;;  %s678_s18 = sadd.s32 4294967295, %s818_s16   ;;  %s818_s16 = sphi %s849_s16, %s13_s16   ;;  %s814_s15 = sphi %s847_s15, %s950_s15   ;;  %s810_s14 = sphi %s845_s14, %s949_s14   ;;  %s806_s13 = sphi %s843_s13, %s948_s13   ;;  %s802_s12 = sphi %s841_s12, %s947_s12  }
   0x4   : > { %p30_p0 = scmp.ge.s32.totalorder %s28_s17, 2  ;;  %p76_p1 = scmp.ne.s32.totalorder %s806_s13, %s802_s12 }
   0x5   : > { %p77_p2 = scmp.eq.s32.totalorder %s818_s16, 0  ;;  %p134_p4 = scmp.eq.s32.totalorder %s678_s18, 1 }
   0x6   : > { %s952_s17 = smov (%p30_p0, %s28_s17), 0  ;;  %s69_s20 = sadd.s32 1, %s806_s13 }
   0x7   : > { %p78_p3 = por %p77_p2, %p76_p1  ;;  %s65_s19 = ssub.s32 %s814_s15, %s952_s17 }
   0x8   : > { %p67_p5 = scmp.eq.s32.totalorder %s65_s19, 0  ;;  %p876_p6 = por %p134_p4, %p76_p1 }
   0x9   : > { %p682_p7 = scmp.ge.s32.totalorder %s818_s16, 2 }
   0xa   : > { %s881_s22 = scalar_select %p67_p5, %s806_s13, %s69_s20  }
   0xb   : > { %168 = sbr.rel (%p682_p7) target bundleno = 30 (0x1e), region = 20 }
  0x12   : > { %171 = sbr.rel (!%p78_p3) target bundleno = 30 (0x1e), region = 24  ;;  %s173_s23 = sand.u32 (%p78_p3), 1, %s806_s13  }
  0x13   : > { %s712_s24 = sshll.u32 (%p78_p3), %s814_s15, 3  ;;  %s683_s25 = sshll.u32 (%p78_p3), %s173_s23, 7 }
  0x14   : > { %s889_s28 = scalar_lea.vmem (%p78_p3), %s943_s1, %s712_s24  ;;  %s175_s29 = scalar_lea.vmem (%p78_p3), [#allocation3], %s683_s25 }
  0x15   : > { %v239_v0 = vld [vmem:[%s889_s28] sm:$0xff] (%p78_p3)  ;;  %v241_v1 = vld [vmem:[%s889_s28 + $0x10] sm:$0xff] (%p78_p3) }
  0x16   : > { %v243_v2 = vld [vmem:[%s889_s28 + $0x20] sm:$0xff] (%p78_p3)  ;;  %240 = vst [vmem:[%s175_s29] sm:$0xff] (%p78_p3), %v239_v0  ;;  %242 = vst [vmem:[%s175_s29 + $0x8] sm:$0xff] (%p78_p3), %v241_v1  ;;  %v245_v3 = vld [vmem:[%s889_s28 + $0x30] sm:$0xff] (%p78_p3) }
  0x17   : > { %244 = vst [vmem:[%s175_s29 + $0x10] sm:$0xff] (%p78_p3), %v243_v2  ;;  %v247_v4 = vld [vmem:[%s889_s28 + $0x40] sm:$0xff] (%p78_p3)  ;;  %v249_v5 = vld [vmem:[%s889_s28 + $0x50] sm:$0xff] (%p78_p3)  ;;  %246 = vst [vmem:[%s175_s29 + $0x18] sm:$0xff] (%p78_p3), %v245_v3 }
  0x18   : > { %248 = vst [vmem:[%s175_s29 + $0x20] sm:$0xff] (%p78_p3), %v247_v4  ;;  %250 = vst [vmem:[%s175_s29 + $0x28] sm:$0xff] (%p78_p3), %v249_v5  ;;  %v251_v6 = vld [vmem:[%s889_s28 + $0x60] sm:$0xff] (%p78_p3)  ;;  %v253_v7 = vld [vmem:[%s889_s28 + $0x70] sm:$0xff] (%p78_p3) }
  0x19   : > { %v255_v8 = vld [vmem:[%s889_s28 + $0x80] sm:$0xff]  ;;  %252 = vst [vmem:[%s175_s29 + $0x30] sm:$0xff] %v251_v6  ;;  %254 = vst [vmem:[%s175_s29 + $0x38] sm:$0xff] %v253_v7  ;;  %v257_v9 = vld [vmem:[%s889_s28 + $0x90] sm:$0xff] }
  0x1a   : > { %256 = vst [vmem:[%s175_s29 + $0x40] sm:$0xff] %v255_v8  ;;  %v259_v10 = vld [vmem:[%s889_s28 + $0xa0] sm:$0xff]  ;;  %v261_v11 = vld [vmem:[%s889_s28 + $0xb0] sm:$0xff]  ;;  %258 = vst [vmem:[%s175_s29 + $0x48] sm:$0xff] %v257_v9 }
  0x1b   : > { %260 = vst [vmem:[%s175_s29 + $0x50] sm:$0xff] %v259_v10  ;;  %262 = vst [vmem:[%s175_s29 + $0x58] sm:$0xff] %v261_v11  ;;  %v263_v12 = vld [vmem:[%s889_s28 + $0xc0] sm:$0xff]  ;;  %v265_v13 = vld [vmem:[%s889_s28 + $0xd0] sm:$0xff] }
  0x1c   : > { %v267_v14 = vld [vmem:[%s889_s28 + $0xe0] sm:$0xff]  ;;  %264 = vst [vmem:[%s175_s29 + $0x60] sm:$0xff] %v263_v12  ;;  %266 = vst [vmem:[%s175_s29 + $0x68] sm:$0xff] %v265_v13  ;;  %v269_v15 = vld [vmem:[%s889_s28 + $0xf0] sm:$0xff] }
  0x1d   : > { %268 = vst [vmem:[%s175_s29 + $0x70] sm:$0xff] %v267_v14  ;;  %270 = vst [vmem:[%s175_s29 + $0x78] sm:$0xff] %v269_v15 }
  0x1e PF: > { %p686_p8 = scmp.ge.s32.totalorder %s818_s16, 1  ;;  %p283_p9 = scmp.lt.s32.totalorder %s818_s16, 3 }
  0x20   : > { %p284_p10 = pnand %p686_p8, %p283_p9 }
  0x21   : > { %s290_s30 = sand.u32 (!%p284_p10), 1, %s802_s12   ;;  %v820_v16 = vmov (!%p284_p10), 0   ;;  %v779_v33 = vld [vmem:[%s942_s0] sm:$0xff] (!%p284_p10)   ;;  %s689_s8 = sshll.u32 (!%p284_p10), %s810_s14, 1  ;;  %v519_v34 = vlaneseq (!%p284_p10) }
  0x22   : > { %287 = sbr.rel (%p284_p10) target bundleno = 297 (0x129), region = 66  ;;  %s687_s4 = sshll.u32 (!%p284_p10), %s290_s30, 7  ;;  %491 = vmatprep.mubr.bf16.mxu0 (!%p284_p10), %v820_v16 }
  0x23   : > { %s292_s5 = scalar_lea.vmem (!%p284_p10), [#allocation3], %s687_s4  ;;  %p336_p11 = scmp.lt.s32.totalorder (!%p284_p10), %s689_s8, 3  ;;  %v520_v35 = vshrl.u32 (!%p284_p10), %v519_v34, 7 }
  0x24   : > { %v755_v17 = vld [vmem:[%s292_s5 + $0x4] ss:$8 sps:$4 sm:$0xff] (!%p284_p10)   ;;  %v757_v18 = vld [vmem:[%s292_s5] ss:$8 sps:$4 sm:$0xff] (!%p284_p10)   ;;  %v758_v19 = vld [vmem:[%s292_s5 + $0x14] ss:$8 sps:$4 sm:$0xff] (!%p284_p10)  }
  0x25   : > { %459 = vmatprep.subr.bf16.mxu0 (!%p284_p10), %v755_v17  ;;  %v760_v20 = vld [vmem:[%s292_s5 + $0x10] ss:$8 sps:$4 sm:$0xff] (!%p284_p10)   ;;  %v761_v21 = vld [vmem:[%s292_s5 + $0x24] ss:$8 sps:$4 sm:$0xff] (!%p284_p10)   ;;  %v763_v22 = vld [vmem:[%s292_s5 + $0x20] ss:$8 sps:$4 sm:$0xff] (!%p284_p10)  }
  0x26   : > { %460 = vmatpush1.bf16.msra.mxu0 (!%p284_p10), %v757_v18  ;;  %v764_v23 = vld [vmem:[%s292_s5 + $0x34] ss:$8 sps:$4 sm:$0xff] (!%p284_p10)   ;;  %v766_v24 = vld [vmem:[%s292_s5 + $0x30] ss:$8 sps:$4 sm:$0xff] (!%p284_p10)   ;;  %v767_v25 = vld [vmem:[%s292_s5 + $0x44] ss:$8 sps:$4 sm:$0xff] (!%p284_p10)  }
  0x27   : > { %461 = vmatprep.subr.bf16.mxu0 (!%p284_p10), %v758_v19  ;;  %v769_v26 = vld [vmem:[%s292_s5 + $0x40] ss:$8 sps:$4 sm:$0xff] (!%p284_p10)   ;;  %v770_v27 = vld [vmem:[%s292_s5 + $0x54] ss:$8 sps:$4 sm:$0xff] (!%p284_p10)   ;;  %v772_v28 = vld [vmem:[%s292_s5 + $0x50] ss:$8 sps:$4 sm:$0xff] (!%p284_p10)  }
  0x28   : > { %v773_v29 = vld [vmem:[%s292_s5 + $0x64] ss:$8 sps:$4 sm:$0xff] (!%p284_p10)   ;;  %v775_v30 = vld [vmem:[%s292_s5 + $0x60] ss:$8 sps:$4 sm:$0xff] (!%p284_p10)   ;;  %v776_v31 = vld [vmem:[%s292_s5 + $0x74] ss:$8 sps:$4 sm:$0xff] (!%p284_p10)  }
  0x29   : > { %v778_v32 = vld [vmem:[%s292_s5 + $0x70] ss:$8 sps:$4 sm:$0xff]   ;;  %s954_s8 = smov (!%p336_p11, %s689_s8), 3  ;;  %v521_v36 = vsub.s32 0, %v520_v35  ;;  %v525_v38 = vsub.s32 1, %v520_v35  ;;  %s688_s18 = sshll.u32 %s290_s30, 5 }
  0x2a   : > { %462 = vmatpush1.bf16.msra.mxu0 %v760_v20  ;;  %s338_s11 = scalar_lea.vmem %s944_s2, %s954_s8  ;;  %s323_s19 = scalar_lea.vmem [#allocation4], %s688_s18 }
  0x2b   : > { %463 = vmatprep.subr.bf16.mxu0 %v761_v21  ;;  %v517_v37 = vld [vmem:[%s338_s11] sm:$0x3]  ;;  %s713_s12 = sshll.u32 (%p876_p6), %s810_s14, 4 }
  0x2c   : > { %v522_v39 = vrot.slane %v517_v37, %v521_v36  ;;  %v526_v40 = vrot.slane %v517_v37, %v525_v38  ;;  %s553_s24 = scalar_lea.vmem (%p876_p6), %s945_s3, %s713_s12 }
  0x2e   : > { %464 = vmatpush1.bf16.msra.mxu0 %v763_v22 }
  0x2f   : > { %465 = vmatprep.subr.bf16.mxu0 %v764_v23 }
  0x32   : > { %466 = vmatpush1.bf16.msra.mxu0 %v766_v24 }
  0x33   : > { %467 = vmatprep.subr.bf16.mxu0 %v767_v25 }
  0x36   : > { %468 = vmatpush1.bf16.msra.mxu0 %v769_v26 }
  0x37   : > { %469 = vmatprep.subr.bf16.mxu0 %v770_v27 }
  0x3a   : > { %470 = vmatpush1.bf16.msra.mxu0 %v772_v28 }
  0x3b   : > { %471 = vmatprep.subr.bf16.mxu0 %v773_v29 }
  0x3e   : > { %472 = vmatpush1.bf16.msra.mxu0 %v775_v30 }
  0x3f   : > { %473 = vmatprep.subr.bf16.mxu0 %v776_v31 }
  0x42   : > { %474 = vmatpush1.bf16.msra.mxu0 %v778_v32 }
  0x45   : > { %492 = vmatmul.mubr.bf16.vlgmr.msra.gmra.mrb[0].mxu0 %v779_v33 }
 0x118   : > { %v493_v41 = vpop.f32.mrb[0].mxu0 }
 0x119   : > { %v529_v42 = vadd.f32 %v522_v39, %v493_v41  ;;  %v495_v43 = vpop.f32.mrb[1].mxu0 }
 0x11a   : > { %v530_v44 = vadd.f32 %v526_v40, %v495_v43  ;;  %v497_v45 = vpop.f32.mrb[2].mxu0  ;;  %547 = sbr.rel (!%p876_p6) target bundleno = 297 (0x129), region = 82 }
 0x11b   : > { %v533_v46 = vmax.f32 %v529_v42, 0.0  ;;  %v531_v47 = vadd.f32 %v522_v39, %v497_v45  ;;  %v499_v48 = vpop.f32.mrb[3].mxu0 }
 0x11c   : > { %v534_v49 = vmax.f32 %v530_v44, 0.0  ;;  %v532_v50 = vadd.f32 %v526_v40, %v499_v48 }
 0x11d   : > { %537 = vst [vmem:[%s323_s19] sm:$0xff] %v533_v46  ;;  %v535_v51 = vmax.f32 %v531_v47, 0.0 }
 0x11e   : > { %538 = vst [vmem:[%s323_s19 + $0x8] sm:$0xff] %v534_v49  ;;  %v536_v52 = vmax.f32 %v532_v50, 0.0 }
 0x11f   : > { %539 = vst [vmem:[%s323_s19 + $0x10] sm:$0xff] %v535_v51 }
 0x120   : > { %540 = vst [vmem:[%s323_s19 + $0x18] sm:$0xff] %v536_v52 }
 0x124   : > { %v566_v53 = vld [vmem:[%s323_s19] sm:$0xff] }
 0x125   : > { %v568_v54 = vld [vmem:[%s323_s19 + $0x8] sm:$0xff]  ;;  %567 = vst [vmem:[%s553_s24] sm:$0xff] %v566_v53 }
 0x126   : > { %v570_v55 = vld [vmem:[%s323_s19 + $0x10] sm:$0xff]  ;;  %569 = vst [vmem:[%s553_s24 + $0x8] sm:$0xff] %v568_v54 }
 0x127   : > { %v572_v56 = vld [vmem:[%s323_s19 + $0x18] sm:$0xff]  ;;  %571 = vst [vmem:[%s553_s24 + $0x20] sm:$0xff] %v570_v55 }
 0x128   : > { %573 = vst [vmem:[%s553_s24 + $0x28] sm:$0xff] %v572_v56 }
 0x129 PF: > { %s13_s16 = sadd.s32 1, %s818_s16   ;;  %s947_s12 = smov %s806_s13 }
 0x12a   : > { %p10_p12 = scmp.ge.s32.totalorder %s13_s16, 4   ;;  %s948_s13 = smov %s881_s22 }
 0x12b   : > { %s949_s14 = smov %s814_s15  ;;  %s950_s15 = smov %s952_s17 }
 0x12c   :  { %12 = sbr.rel (!%p10_p12) target bundleno = 3 (0x3), region = 142 }

// kernel: dqn_forward.9
= control target key start
LH: loop header
LB: loop body
LE: loop exit
PB: predicated region body
PF: predicated region fallthrough
CT: control target
= control target key end

     0   :  { %s665_s1 = inlined_call_operand.vmem [shape: bf16[512,128], index: 1, kind: input, shape index: {}]   ;;  %s666_s0 = inlined_call_operand.vmem [shape: bf16[16,512], index: 0, kind: input, shape index: {}]   ;;  %s667_s2 = inlined_call_operand.vmem [shape: f32[1,128], index: 2, kind: input, shape index: {}]   ;;  %s668_s3 = inlined_call_operand.vmem [shape: f32[16,128], index: 3, kind: output, shape index: {}]  }
   0x1   :  { %v490_v0 = vld [vmem:[%s665_s1 + $0x40] sm:$0xff]   ;;  %v494_v4 = vld [vmem:[%s665_s1 + $0x48] sm:$0xff]   ;;  %v498_v8 = vld [vmem:[%s665_s1 + $0x50] sm:$0xff]  }
   0x2   :  { %v491_v1 = vld [vmem:[%s665_s1 + $0xc0] sm:$0xff]   ;;  %446 = vmatprep.subr.bf16.mxu0 %v490_v0  ;;  %v495_v5 = vld [vmem:[%s665_s1 + $0xc8] sm:$0xff]   ;;  %v499_v9 = vld [vmem:[%s665_s1 + $0xd0] sm:$0xff]  }
   0x3   :  { %v492_v2 = vld [vmem:[%s665_s1] sm:$0xff]   ;;  %468 = vmatprep.subr.bf16.mxu1 %v491_v1  ;;  %v496_v6 = vld [vmem:[%s665_s1 + $0x8] sm:$0xff]   ;;  %v500_v10 = vld [vmem:[%s665_s1 + $0x10] sm:$0xff]  }
   0x4   :  { %v493_v3 = vld [vmem:[%s665_s1 + $0x80] sm:$0xff]   ;;  %447 = vmatpush3.bf16.msra.mxu0 %v492_v2  ;;  %v497_v7 = vld [vmem:[%s665_s1 + $0x88] sm:$0xff]   ;;  %v501_v11 = vld [vmem:[%s665_s1 + $0x90] sm:$0xff]  }
   0x5   :  { %469 = vmatpush3.bf16.msra.mxu1 %v493_v3  ;;  %448 = vmatprep.subr.bf16.mxu0 %v494_v4  ;;  %v502_v12 = vld [vmem:[%s665_s1 + $0x58] sm:$0xff]   ;;  %v506_v16 = vld [vmem:[%s665_s1 + $0x60] sm:$0xff]   ;;  %v510_v20 = vld [vmem:[%s665_s1 + $0x68] sm:$0xff]  }
   0x6   :  { %470 = vmatprep.subr.bf16.mxu1 %v495_v5  ;;  %v503_v13 = vld [vmem:[%s665_s1 + $0xd8] sm:$0xff]   ;;  %v507_v17 = vld [vmem:[%s665_s1 + $0xe0] sm:$0xff]   ;;  %v511_v21 = vld [vmem:[%s665_s1 + $0xe8] sm:$0xff]  }
   0x7   :  { %v504_v14 = vld [vmem:[%s665_s1 + $0x18] sm:$0xff]   ;;  %v508_v18 = vld [vmem:[%s665_s1 + $0x20] sm:$0xff]   ;;  %v512_v22 = vld [vmem:[%s665_s1 + $0x28] sm:$0xff]  }
   0x8   :  { %449 = vmatpush3.bf16.msra.mxu0 %v496_v6  ;;  %v505_v15 = vld [vmem:[%s665_s1 + $0x98] sm:$0xff]   ;;  %v509_v19 = vld [vmem:[%s665_s1 + $0xa0] sm:$0xff]   ;;  %v513_v23 = vld [vmem:[%s665_s1 + $0xa8] sm:$0xff]  }
   0x9   :  { %471 = vmatpush3.bf16.msra.mxu1 %v497_v7  ;;  %450 = vmatprep.subr.bf16.mxu0 %v498_v8  ;;  %v514_v24 = vld [vmem:[%s665_s1 + $0x70] sm:$0xff]   ;;  %v518_v28 = vld [vmem:[%s665_s1 + $0x78] sm:$0xff]   ;;  %v445_v45 = vld [vmem:[%s667_s2] ss:$0 sm:$0xff] }
   0xa   :  { %472 = vmatprep.subr.bf16.mxu1 %v499_v9  ;;  %v515_v25 = vld [vmem:[%s665_s1 + $0xf0] sm:$0xff]   ;;  %v519_v29 = vld [vmem:[%s665_s1 + $0xf8] sm:$0xff]  }
   0xb   :  { %v516_v26 = vld [vmem:[%s665_s1 + $0x30] sm:$0xff]   ;;  %v520_v30 = vld [vmem:[%s665_s1 + $0x38] sm:$0xff]  }
   0xc   :  { %451 = vmatpush3.bf16.msra.mxu0 %v500_v10  ;;  %v517_v27 = vld [vmem:[%s665_s1 + $0xb0] sm:$0xff]   ;;  %v521_v31 = vld [vmem:[%s665_s1 + $0xb8] sm:$0xff]  }
   0xd   :  { %473 = vmatpush3.bf16.msra.mxu1 %v501_v11  ;;  %452 = vmatprep.subr.bf16.mxu0 %v502_v12  ;;  %v522_v32 = vld [vmem:[%s666_s0] ss:$16 sps:$4 sm:$0xff]   ;;  %v524_v33 = vld [vmem:[%s666_s0 + $0x4] ss:$16 sps:$4 sm:$0xff]   ;;  %v525_v34 = vld [vmem:[%s666_s0 + $0x8] ss:$16 sps:$4 sm:$0xff]  }
   0xe   :  { %474 = vmatprep.subr.bf16.mxu1 %v503_v13  ;;  %v527_v35 = vld [vmem:[%s666_s0 + $0xc] ss:$16 sps:$4 sm:$0xff]   ;;  %335 = vmatprep.mubr.bf16.mxu0 %v524_v33 }
   0xf   :  { %376 = vmatprep.mubr.bf16.mxu1 %v527_v35 }
  0x10   :  { %453 = vmatpush3.bf16.msra.mxu0 %v504_v14 }
  0x11   :  { %475 = vmatpush3.bf16.msra.mxu1 %v505_v15  ;;  %454 = vmatprep.subr.bf16.mxu0 %v506_v16 }
  0x12   :  { %476 = vmatprep.subr.bf16.mxu1 %v507_v17 }
  0x14   :  { %455 = vmatpush3.bf16.msra.mxu0 %v508_v18 }
  0x15   :  { %477 = vmatpush3.bf16.msra.mxu1 %v509_v19  ;;  %456 = vmatprep.subr.bf16.mxu0 %v510_v20 }
  0x16   :  { %478 = vmatprep.subr.bf16.mxu1 %v511_v21 }
  0x18   :  { %457 = vmatpush3.bf16.msra.mxu0 %v512_v22 }
  0x19   :  { %479 = vmatpush3.bf16.msra.mxu1 %v513_v23  ;;  %458 = vmatprep.subr.bf16.mxu0 %v514_v24 }
  0x1a   :  { %480 = vmatprep.subr.bf16.mxu1 %v515_v25 }
  0x1c   :  { %459 = vmatpush3.bf16.msra.mxu0 %v516_v26 }
  0x1d   :  { %481 = vmatpush3.bf16.msra.mxu1 %v517_v27  ;;  %460 = vmatprep.subr.bf16.mxu0 %v518_v28 }
  0x1e   :  { %482 = vmatprep.subr.bf16.mxu1 %v519_v29 }
  0x20   :  { %461 = vmatpush3.bf16.msra.mxu0 %v520_v30 }
  0x21   :  { %483 = vmatpush3.bf16.msra.mxu1 %v521_v31 }
  0x23   :  { %336 = vmatmul.mubr.bf16.vlgmr.msra.gmra.mrb[0].mxu0 %v522_v32 }
  0x24   :  { %377 = vmatmul.mubr.bf16.vlgmr.msra.gmra.mrb[0].mxu1 %v525_v34 }
  0xf6   :  { %v462_v36 = vpop.f32.mrb[0].mxu0 }
  0xf7   :  { %v484_v37 = vpop.f32.mrb[0].mxu1  ;;  %v463_v38 = vpop.f32.mrb[1].mxu0 }
  0xf8   :  { %v464_v39 = vadd.f32 %v463_v38, %v462_v36  ;;  %v485_v40 = vpop.f32.mrb[1].mxu1  ;;  %v465_v41 = vpop.f32.mrb[2].mxu0 }
  0xf9   :  { %v486_v42 = vadd.f32 %v485_v40, %v484_v37  ;;  %v487_v43 = vpop.f32.mrb[2].mxu1  ;;  %v466_v44 = vpop.f32.mrb[3].mxu0 }
  0xfa   :  { %v467_v46 = vadd.f32 %v466_v44, %v465_v41  ;;  %v488_v47 = vpop.f32.mrb[3].mxu1 }
  0xfb   :  { %v379_v48 = vadd.f32 %v486_v42, %v464_v39  ;;  %v489_v49 = vadd.f32 %v488_v47, %v487_v43 }
  0xfd   :  { %v401_v50 = vadd.f32 %v445_v45, %v379_v48  ;;  %v382_v51 = vadd.f32 %v489_v49, %v467_v46 }
  0xff   :  { %403 = vst [vmem:[%s668_s3] sm:$0xff] %v401_v50  ;;  %v402_v52 = vadd.f32 %v445_v45, %v382_v51 }
 0x101   :  { %404 = vst [vmem:[%s668_s3 + $0x8] sm:$0xff] %v402_v52 }

</bundles_post_ra>
